<compile_context>
chip_gen: v7x
topology: tpu7x:2x2x1
jax: 0.10.0
libtpu: 0.0.40
codegen_flags: <defaults>
</compile_context>

<pallas_src>
import functools
import math

import jax
import jax.numpy as jnp
from jax.experimental import pallas as pl
from jax.experimental.pallas import tpu as pltpu


_MASK_VALUE = -1e9  # large-finite (not -inf) so exp(m_prev - m_new) never NaNs


def _round_up(x, m):
    return (x + m - 1) // m * m


def _flash_mha_kernel(*refs, has_kbias, has_abias):
    """Flash attention with online softmax over the trailing kv grid axis.

    Refs (leading batch dim squeezed by the BlockSpecs):
      q_ref:     (H, tq, dk)   compute dtype (bf16)
      k_ref:     (H, tk, dk)
      v_ref:     (H, tk, dv)
      kbias_ref: (1, tk)       f32 additive key bias (padding / key_padding_mask), optional
      abias_ref: (tq, tk)      f32 additive attention bias (attn_mask), optional
      o_ref:     (tq, H*dv)    lane-dense output, written once on the last kv step
      m_sc/l_sc: (H, tq, 1)    f32 running max / running sum
      acc_sc:    (H, tq, dv)   f32 output accumulator
    """
    it = iter(refs)
    q_ref = next(it)
    k_ref = next(it)
    v_ref = next(it)
    kbias_ref = next(it) if has_kbias else None
    abias_ref = next(it) if has_abias else None
    o_ref = next(it)
    m_sc = next(it)
    l_sc = next(it)
    acc_sc = next(it)

    ki = pl.program_id(2)
    nk = pl.num_programs(2)

    @pl.when(ki == 0)
    def _():
        m_sc[...] = jnp.full_like(m_sc, -jnp.inf)
        l_sc[...] = jnp.zeros_like(l_sc)
        acc_sc[...] = jnp.zeros_like(acc_sc)

    q = q_ref[...]                               # (H, tq, dk) bf16 (scale folded into Wq)
    k = k_ref[...]                               # (H, tk, dk) bf16
    v = v_ref[...]                               # (H, tk, dv) bf16

    # Per-head QK^T on the MXU: bf16 operands, f32 accumulation.
    s = jnp.einsum("hqd,hkd->hqk", q, k,
                   preferred_element_type=jnp.float32)        # (H, tq, tk) f32
    if has_kbias:
        s = s + kbias_ref[...][None, :, :]       # (1,1,tk) -> broadcast over heads & tq
    if has_abias:
        s = s + abias_ref[...][None, :, :]       # (1,tq,tk) -> broadcast over heads

    # Online (streaming) softmax update; statistics stay in f32.
    m_prev = m_sc[...]
    m_new = jnp.maximum(m_prev, jnp.max(s, axis=-1, keepdims=True))
    alpha = jnp.exp(m_prev - m_new)
    p = jnp.exp(s - m_new)
    l_sc[...] = alpha * l_sc[...] + jnp.sum(p, axis=-1, keepdims=True)
    acc_sc[...] = alpha * acc_sc[...] + jnp.einsum(
        "hqk,hkd->hqd", p.astype(v.dtype), v,
        preferred_element_type=jnp.float32)
    m_sc[...] = m_new

    @pl.when(ki == nk - 1)
    def _():
        inv_l = pl.reciprocal(l_sc[...], approx=True)          # EUP slot, nearly free
        o = acc_sc[...] * inv_l                                # (H, tq, dv) f32
        # Fold heads into the lane dim with ONE full-width store: (tq, H*dv).
        o_ref[...] = (o.transpose(1, 0, 2)
                       .reshape(o_ref.shape)
                       .astype(o_ref.dtype))


def mha_attention(q, k, v, key_bias=None, attn_bias=None,
                  compute_dtype=jnp.bfloat16, out_dtype=None):
    """q, k: [B,H,Lq|Lk,dk]; v: [B,H,Lk,dv].
    key_bias: optional additive [B, Lk]; attn_bias: optional additive [B, Lq, Lk].
    Returns [B, Lq, H*dv] with heads folded (lane-dense) into the last dim."""
    B, H, Lq, dk = q.shape
    Lk, dv = v.shape[2], v.shape[3]
    out_dtype = q.dtype if out_dtype is None else out_dtype

    # Tiling: lane-dense kv tiles (multiples of 128); q tiles are multiples of 8.
    tq = 128 if Lq > 128 else _round_up(Lq, 8)
    Lq_pad = _round_up(Lq, tq)
    Lk_pad = _round_up(Lk, 128)
    tk = 256 if (Lk_pad >= 256 and Lk_pad % 256 == 0) else 128
    nq, nk = Lq_pad // tq, Lk_pad // tk

    qc = q.astype(compute_dtype)
    kc = k.astype(compute_dtype)
    vc = v.astype(compute_dtype)
    if Lq_pad != Lq:
        qc = jnp.pad(qc, ((0, 0), (0, 0), (0, Lq_pad - Lq), (0, 0)))
    if Lk_pad != Lk:
        kc = jnp.pad(kc, ((0, 0), (0, 0), (0, Lk_pad - Lk), (0, 0)))
        vc = jnp.pad(vc, ((0, 0), (0, 0), (0, Lk_pad - Lk), (0, 0)))

    # Key bias [B, 1, Lk_pad]: carries both the user key_padding_mask and the
    # sequence-length padding mask.  Lq-times smaller than a dense mask slab.
    kb = None
    if key_bias is not None or Lk_pad != Lk:
        kb = (jnp.zeros((B, Lk), jnp.float32) if key_bias is None
              else key_bias.astype(jnp.float32))
        if Lk_pad != Lk:
            kb = jnp.pad(kb, ((0, 0), (0, Lk_pad - Lk)),
                         constant_values=_MASK_VALUE)
        kb = kb.reshape(B, 1, Lk_pad)

    ab = None
    if attn_bias is not None:
        ab = attn_bias.astype(jnp.float32)
        ab = jnp.pad(ab, ((0, 0), (0, Lq_pad - Lq), (0, Lk_pad - Lk)))

    kernel = functools.partial(_flash_mha_kernel,
                               has_kbias=kb is not None,
                               has_abias=ab is not None)

    in_specs = [
        pl.BlockSpec((None, H, tq, dk), lambda b, qi, ki: (b, 0, qi, 0)),
        pl.BlockSpec((None, H, tk, dk), lambda b, qi, ki: (b, 0, ki, 0)),
        pl.BlockSpec((None, H, tk, dv), lambda b, qi, ki: (b, 0, ki, 0)),
    ]
    args = [qc, kc, vc]
    if kb is not None:
        in_specs.append(pl.BlockSpec((None, 1, tk), lambda b, qi, ki: (b, 0, ki)))
        args.append(kb)
    if ab is not None:
        in_specs.append(pl.BlockSpec((None, tq, tk), lambda b, qi, ki: (b, qi, ki)))
        args.append(ab)

    cbytes = jnp.dtype(compute_dtype).itemsize
    obytes = jnp.dtype(out_dtype).itemsize
    bytes_accessed = (B * H * Lq_pad * dk * cbytes                    # q, read once
                      + nq * B * H * Lk_pad * (dk + dv) * cbytes      # k, v re-read per q tile
                      + (nq * B * Lk_pad * 4 if kb is not None else 0)
                      + (B * Lq_pad * Lk_pad * 4 if ab is not None else 0)
                      + B * Lq_pad * H * dv * obytes)                 # output
    cost = pl.CostEstimate(
        flops=int(2 * B * H * Lq_pad * Lk_pad * (dk + dv)),
        transcendentals=int(B * H * Lq_pad * Lk_pad),
        bytes_accessed=int(bytes_accessed),
    )

    # VMEM budget from actual tile sizes (double-buffered I/O + scratch + f32
    # score/p slabs), capped well below v7x's 64 MiB per-TC capacity.
    in_tile = (H * tq * dk + H * tk * dk + H * tk * dv) * cbytes
    if kb is not None:
        in_tile += tk * 4
    if ab is not None:
        in_tile += tq * tk * 4
    out_tile = tq * H * dv * obytes
    scratch_bytes = (2 * H * tq + H * tq * dv) * 4
    slab_bytes = 3 * H * tq * tk * 4
    est = 2 * (in_tile + out_tile) + scratch_bytes + slab_bytes
    vmem_limit = int(min(48 << 20, max(16 << 20, 2 * est)))

    out = pl.pallas_call(
        kernel,
        out_shape=jax.ShapeDtypeStruct((B, Lq_pad, H * dv), out_dtype),
        grid=(B, nq, nk),
        in_specs=in_specs,
        out_specs=pl.BlockSpec((None, tq, H * dv), lambda b, qi, ki: (b, qi, 0)),
        scratch_shapes=[
            pltpu.VMEM((H, tq, 1), jnp.float32),   # running max m
            pltpu.VMEM((H, tq, 1), jnp.float32),   # running sum l
            pltpu.VMEM((H, tq, dv), jnp.float32),  # output accumulator
        ],
        compiler_params=pltpu.CompilerParams(
            dimension_semantics=("parallel", "parallel", "arbitrary"),
            vmem_limit_bytes=vmem_limit,
        ),
        cost_estimate=cost,
    )(*args)

    return out[:, :Lq, :] if Lq_pad != Lq else out


class MultiHeadAttention:
    """JAX re-implementation of the PyTorch MultiHeadAttention submodule."""

    def __init__(self, num_heads, hidden_key_size, hidden_value_size, rng_key):
        self.H = num_heads
        self.dk = hidden_key_size
        self.dv = hidden_value_size
        ek = num_heads * hidden_key_size
        ev = num_heads * hidden_value_size
        kq, kk, kv, ko = jax.random.split(rng_key, 4)
        sk = 1.0 / math.sqrt(ek)
        sv = 1.0 / math.sqrt(ev)
        # nn.Linear-style uniform init.  The attention scale 1/sqrt(dk) is folded
        # into Wq so the kernel never rescales the resident q tile per kv step.
        self.Wq = (jax.random.uniform(kq, (ek, ek), jnp.float32, -sk, sk)
                   * (1.0 / math.sqrt(hidden_key_size)))
        self.Wk = jax.random.uniform(kk, (ek, ek), jnp.float32, -sk, sk)
        self.Wv = jax.random.uniform(kv, (ev, ev), jnp.float32, -sv, sv)
        self.Wo = jax.random.uniform(ko, (ev, ev), jnp.float32, -sv, sv)

    @staticmethod
    def _additive_biases(attn_mask, key_padding_mask, B, Lq, Lk):
        """Return (key_bias [B,Lk] or None, attn_bias [B,Lq,Lk] or None)."""
        key_bias = None
        if key_padding_mask is not None:
            kpm = jnp.asarray(key_padding_mask, jnp.bool_)     # True = padded key
            key_bias = jnp.where(kpm, jnp.float32(_MASK_VALUE), jnp.float32(0.0))
        attn_bias = None
        if attn_mask is not None:
            am = jnp.asarray(attn_mask)
            if am.dtype == jnp.bool_:
                am = jnp.where(am, jnp.float32(_MASK_VALUE), jnp.float32(0.0))
            else:
                am = am.astype(jnp.float32)
            attn_bias = jnp.broadcast_to(am, (B, Lq, Lk))
        return key_bias, attn_bias

    def __call__(self, query, key, value, attn_mask=None, key_padding_mask=None):
        B, Lq, _ = query.shape
        _, Lk, _ = key.shape
        H, dk, dv = self.H, self.dk, self.dv

        # Projections + head split (XLA glue; attention kernel runs in bf16).
        q = (query @ self.Wq).reshape(B, Lq, H, dk).transpose(0, 2, 1, 3)
        k = (key @ self.Wk).reshape(B, Lk, H, dk).transpose(0, 2, 1, 3)
        v = (value @ self.Wv).reshape(B, Lk, H, dv).transpose(0, 2, 1, 3)

        key_bias, attn_bias = self._additive_biases(attn_mask, key_padding_mask,
                                                    B, Lq, Lk)
        o = mha_attention(q, k, v, key_bias, attn_bias)   # [B, Lq, H*dv]
        return o @ self.Wo                                 # output projection


class Model:
    def __init__(self, num_heads=8, hidden_key_size=8, hidden_value_size=8,
                 rng_key=None):
        if rng_key is None:
            rng_key = jax.random.PRNGKey(42)
        self.attn = MultiHeadAttention(num_heads, hidden_key_size,
                                       hidden_value_size, rng_key)

    def forward(self, query, key, value, attn_mask=None, key_padding_mask=None):
        return self.attn(query, key, value, attn_mask, key_padding_mask)


def _reference_forward(model, query, key, value, key_padding_mask=None):
    """Pure-JAX f32 reference (no Pallas). Note: 1/sqrt(dk) is already folded
    into model.attn.Wq, so no extra score scaling here."""
    a = model.attn
    B, Lq, _ = query.shape
    _, Lk, _ = key.shape
    H, dk, dv = a.H, a.dk, a.dv
    q = (query @ a.Wq).reshape(B, Lq, H, dk).transpose(0, 2, 1, 3)
    k = (key @ a.Wk).reshape(B, Lk, H, dk).transpose(0, 2, 1, 3)
    v = (value @ a.Wv).reshape(B, Lk, H, dv).transpose(0, 2, 1, 3)
    s = jnp.einsum("bhqd,bhkd->bhqk", q, k)
    if key_padding_mask is not None:
        s = s + jnp.where(key_padding_mask[:, None, None, :], _MASK_VALUE, 0.0)
    p = jax.nn.softmax(s, axis=-1)
    o = jnp.einsum("bhqk,bhkd->bhqd", p, v)
    o = o.transpose(0, 2, 1, 3).reshape(B, Lq, H * dv)
    return o @ a.Wo


if __name__ == "__main__":
    # Small shapes consistent with the module: 8 heads x 8 head-dim = 64 embed.
    B, Lq, Lk = 2, 8, 8
    H, dk, dv = 8, 8, 8
    ek, ev = H * dk, H * dv

    root = jax.random.PRNGKey(0)
    kq, kk, kv, kparams = jax.random.split(root, 4)
    query = jax.random.normal(kq, (B, Lq, ek), jnp.float32)
    key = jax.random.normal(kk, (B, Lk, ek), jnp.float32)
    value = jax.random.normal(kv, (B, Lk, ev), jnp.float32)

    model = Model(num_heads=H, hidden_key_size=dk, hidden_value_size=dv,
                  rng_key=kparams)

    # No user mask (the 8 -> 128 key-length padding is masked via the tiny key bias).
    out = jax.block_until_ready(model.forward(query, key, value))
    assert out.shape == (B, Lq, ev), out.shape
    assert bool(jnp.isfinite(out).all())
    ref = _reference_forward(model, query, key, value)
    assert bool(jnp.allclose(out, ref, atol=2e-2, rtol=2e-2)), \
        float(jnp.max(jnp.abs(out - ref)))

    # key_padding_mask path: last two key positions padded out.
    kpm = jnp.zeros((B, Lk), dtype=jnp.bool_).at[:, Lk - 2:].set(True)
    out_m = jax.block_until_ready(model.forward(query, key, value,
                                                key_padding_mask=kpm))
    assert out_m.shape == (B, Lq, ev), out_m.shape
    assert bool(jnp.isfinite(out_m).all())
    ref_m = _reference_forward(model, query, key, value, key_padding_mask=kpm)
    assert bool(jnp.allclose(out_m, ref_m, atol=2e-2, rtol=2e-2)), \
        float(jnp.max(jnp.abs(out_m - ref_m)))

    print("KERNEL_OK")
</pallas_src>

<mosaic_0001>
module attributes {stable_mosaic.version = 11 : i64} {
  func.func @_flash_mha_kernel(%arg0: i32, %arg1: i32, %arg2: i32, %arg3: memref<1x8x8x8xbf16, #tpu.memory_space<vmem>>, %arg4: memref<1x8x128x8xbf16, #tpu.memory_space<vmem>>, %arg5: memref<1x8x128x8xbf16, #tpu.memory_space<vmem>>, %arg6: memref<1x1x128xf32, #tpu.memory_space<vmem>>, %arg7: memref<1x8x64xf32, #tpu.memory_space<vmem>>, %arg8: memref<8x8x1xf32, #tpu.memory_space<vmem>>, %arg9: memref<8x8x1xf32, #tpu.memory_space<vmem>>, %arg10: memref<8x8x8xf32, #tpu.memory_space<vmem>>) attributes {dimension_semantics = [#tpu.dimension_semantics<parallel>, #tpu.dimension_semantics<parallel>, #tpu.dimension_semantics<arbitrary>], iteration_bounds = array<i64: 2, 1, 1>, scalar_prefetch = 0 : i64, scratch_operands = 3 : i64, tpu.core_type = #tpu.core_type<tc>, window_params = [{transform_indices = @transform_0, window_bounds = array<i64: 1, 8, 8, 8>}, {transform_indices = @transform_1, window_bounds = array<i64: 1, 8, 128, 8>}, {transform_indices = @transform_2, window_bounds = array<i64: 1, 8, 128, 8>}, {transform_indices = @transform_3, window_bounds = array<i64: 1, 1, 128>}, {transform_indices = @transform_4, window_bounds = array<i64: 1, 8, 64>}]} {
    %c0_i32 = arith.constant 0 : i32
    %0 = arith.cmpi eq, %arg2, %c0_i32 : i32
    %1 = arith.extui %0 : i1 to i32
    %c0_i32_0 = arith.constant 0 : i32
    %2 = arith.cmpi ne, %1, %c0_i32_0 : i32
    scf.if %2 {
      %cst_38 = arith.constant 0xFF800000 : f32
      %41 = vector.broadcast %cst_38 : f32 to vector<8x8x1xf32>
      %c0_39 = arith.constant 0 : index
      %c0_40 = arith.constant 0 : index
      %c0_41 = arith.constant 0 : index
      %42 = vector.load %arg8[%c0_39, %c0_40, %c0_41] : memref<8x8x1xf32, #tpu.memory_space<vmem>>, vector<8x8x1xf32>
      tpu.vector_store %arg8[%c0_39, %c0_40, %c0_41], %41 {strides = array<i32>} : memref<8x8x1xf32, #tpu.memory_space<vmem>>, vector<8x8x1xf32>,
      %cst_42 = arith.constant 0.000000e+00 : f32
      %43 = vector.broadcast %cst_42 : f32 to vector<8x8x1xf32>
      %c0_43 = arith.constant 0 : index
      %c0_44 = arith.constant 0 : index
      %c0_45 = arith.constant 0 : index
      %44 = vector.load %arg9[%c0_43, %c0_44, %c0_45] : memref<8x8x1xf32, #tpu.memory_space<vmem>>, vector<8x8x1xf32>
      tpu.vector_store %arg9[%c0_43, %c0_44, %c0_45], %43 {strides = array<i32>} : memref<8x8x1xf32, #tpu.memory_space<vmem>>, vector<8x8x1xf32>,
      %cst_46 = arith.constant 0.000000e+00 : f32
      %45 = vector.broadcast %cst_46 : f32 to vector<8x8x8xf32>
      %c0_47 = arith.constant 0 : index
      %c0_48 = arith.constant 0 : index
      %c0_49 = arith.constant 0 : index
      %46 = vector.load %arg10[%c0_47, %c0_48, %c0_49] : memref<8x8x8xf32, #tpu.memory_space<vmem>>, vector<8x8x8xf32>
      tpu.vector_store %arg10[%c0_47, %c0_48, %c0_49], %45 {strides = array<i32>} : memref<8x8x8xf32, #tpu.memory_space<vmem>>, vector<8x8x8xf32>,
    } else {
    }
    %c0 = arith.constant 0 : index
    %c0_1 = arith.constant 0 : index
    %c0_2 = arith.constant 0 : index
    %c0_3 = arith.constant 0 : index
    %3 = vector.load %arg3[%c0, %c0_1, %c0_2, %c0_3] : memref<1x8x8x8xbf16, #tpu.memory_space<vmem>>, vector<1x8x8x8xbf16>
    %4 = vector.shape_cast %3 : vector<1x8x8x8xbf16> to vector<8x8x8xbf16>
    %c0_4 = arith.constant 0 : index
    %c0_5 = arith.constant 0 : index
    %c0_6 = arith.constant 0 : index
    %c0_7 = arith.constant 0 : index
    %5 = vector.load %arg4[%c0_4, %c0_5, %c0_6, %c0_7] : memref<1x8x128x8xbf16, #tpu.memory_space<vmem>>, vector<1x8x128x8xbf16>
    %6 = vector.shape_cast %5 : vector<1x8x128x8xbf16> to vector<8x128x8xbf16>
    %c0_8 = arith.constant 0 : index
    %c0_9 = arith.constant 0 : index
    %c0_10 = arith.constant 0 : index
    %c0_11 = arith.constant 0 : index
    %7 = vector.load %arg5[%c0_8, %c0_9, %c0_10, %c0_11] : memref<1x8x128x8xbf16, #tpu.memory_space<vmem>>, vector<1x8x128x8xbf16>
    %8 = vector.shape_cast %7 : vector<1x8x128x8xbf16> to vector<8x128x8xbf16>
    "tpu.trace_start"() <{level = 10 : i32, message = "hqd,hkd->hqk"}> : () -> ()
    %cst = arith.constant dense<0.000000e+00> : vector<8x8x128xf32>
    %9 = tpu.matmul %4, %6, %cst {dimension_numbers = #tpu.dot_dimension_numbers<[2], [2], [1], [1], [0, 0, 0, 1, 1, 1], [0], [0]>} : vector<8x8x8xbf16>, vector<8x128x8xbf16>, vector<8x8x128xf32> -> vector<8x8x128xf32>
    "tpu.trace_stop"() : () -> ()
    %c0_12 = arith.constant 0 : index
    %c0_13 = arith.constant 0 : index
    %c0_14 = arith.constant 0 : index
    %10 = vector.load %arg6[%c0_12, %c0_13, %c0_14] : memref<1x1x128xf32, #tpu.memory_space<vmem>>, vector<1x1x128xf32>
    %11 = vector.shape_cast %10 : vector<1x1x128xf32> to vector<1x128xf32>
    %12 = vector.shape_cast %11 : vector<1x128xf32> to vector<1x1x128xf32>
    %13 = vector.broadcast %12 : vector<1x1x128xf32> to vector<8x8x128xf32>
    %14 = arith.addf %9, %13 : vector<8x8x128xf32>
    %c0_15 = arith.constant 0 : index
    %c0_16 = arith.constant 0 : index
    %c0_17 = arith.constant 0 : index
    %15 = vector.load %arg8[%c0_15, %c0_16, %c0_17] : memref<8x8x1xf32, #tpu.memory_space<vmem>>, vector<8x8x1xf32>
    %cst_18 = arith.constant dense<0xFF800000> : vector<8x8xf32>
    %16 = vector.multi_reduction <maximumf>, %14, %cst_18 [2] : vector<8x8x128xf32> to vector<8x8xf32>
    %17 = vector.shape_cast %16 : vector<8x8xf32> to vector<8x8x1xf32>
    %18 = arith.maximumf %15, %17 : vector<8x8x1xf32>
    %19 = arith.subf %15, %18 : vector<8x8x1xf32>
    %20 = math.exp %19 : vector<8x8x1xf32>
    %21 = vector.broadcast %18 : vector<8x8x1xf32> to vector<8x8x128xf32>
    %22 = arith.subf %14, %21 : vector<8x8x128xf32>
    %23 = math.exp %22 : vector<8x8x128xf32>
    %c0_19 = arith.constant 0 : index
    %c0_20 = arith.constant 0 : index
    %c0_21 = arith.constant 0 : index
    %24 = vector.load %arg9[%c0_19, %c0_20, %c0_21] : memref<8x8x1xf32, #tpu.memory_space<vmem>>, vector<8x8x1xf32>
    %25 = arith.mulf %20, %24 : vector<8x8x1xf32>
    %cst_22 = arith.constant dense<0.000000e+00> : vector<8x8xf32>
    %26 = vector.multi_reduction <add>, %23, %cst_22 [2] : vector<8x8x128xf32> to vector<8x8xf32>
    %27 = vector.shape_cast %26 : vector<8x8xf32> to vector<8x8x1xf32>
    %28 = arith.addf %25, %27 : vector<8x8x1xf32>
    %c0_23 = arith.constant 0 : index
    %c0_24 = arith.constant 0 : index
    %c0_25 = arith.constant 0 : index
    %29 = vector.load %arg9[%c0_23, %c0_24, %c0_25] : memref<8x8x1xf32, #tpu.memory_space<vmem>>, vector<8x8x1xf32>
    tpu.vector_store %arg9[%c0_23, %c0_24, %c0_25], %28 {strides = array<i32>} : memref<8x8x1xf32, #tpu.memory_space<vmem>>, vector<8x8x1xf32>,
    %c0_26 = arith.constant 0 : index
    %c0_27 = arith.constant 0 : index
    %c0_28 = arith.constant 0 : index
    %30 = vector.load %arg10[%c0_26, %c0_27, %c0_28] : memref<8x8x8xf32, #tpu.memory_space<vmem>>, vector<8x8x8xf32>
    %31 = vector.broadcast %20 : vector<8x8x1xf32> to vector<8x8x8xf32>
    %32 = arith.mulf %31, %30 : vector<8x8x8xf32>
    %33 = arith.truncf %23 : vector<8x8x128xf32> to vector<8x8x128xbf16>
    "tpu.trace_start"() <{level = 10 : i32, message = "hqk,hkd->hqd"}> : () -> ()
    %cst_29 = arith.constant dense<0.000000e+00> : vector<8x8x8xf32>
    %34 = tpu.matmul %33, %8, %cst_29 {dimension_numbers = #tpu.dot_dimension_numbers<[2], [1], [1], [2], [0, 0, 0, 1, 1, 2], [0], [0]>} : vector<8x8x128xbf16>, vector<8x128x8xbf16>, vector<8x8x8xf32> -> vector<8x8x8xf32>
    "tpu.trace_stop"() : () -> ()
    %35 = arith.addf %32, %34 : vector<8x8x8xf32>
    %c0_30 = arith.constant 0 : index
    %c0_31 = arith.constant 0 : index
    %c0_32 = arith.constant 0 : index
    %36 = vector.load %arg10[%c0_30, %c0_31, %c0_32] : memref<8x8x8xf32, #tpu.memory_space<vmem>>, vector<8x8x8xf32>
    tpu.vector_store %arg10[%c0_30, %c0_31, %c0_32], %35 {strides = array<i32>} : memref<8x8x8xf32, #tpu.memory_space<vmem>>, vector<8x8x8xf32>,
    %c0_33 = arith.constant 0 : index
    %c0_34 = arith.constant 0 : index
    %c0_35 = arith.constant 0 : index
    %37 = vector.load %arg8[%c0_33, %c0_34, %c0_35] : memref<8x8x1xf32, #tpu.memory_space<vmem>>, vector<8x8x1xf32>
    tpu.vector_store %arg8[%c0_33, %c0_34, %c0_35], %18 {strides = array<i32>} : memref<8x8x1xf32, #tpu.memory_space<vmem>>, vector<8x8x1xf32>,
    %c0_i32_36 = arith.constant 0 : i32
    %38 = arith.cmpi eq, %arg2, %c0_i32_36 : i32
    %39 = arith.extui %38 : i1 to i32
    %c0_i32_37 = arith.constant 0 : i32
    %40 = arith.cmpi ne, %39, %c0_i32_37 : i32
    scf.if %40 {
      %c0_38 = arith.constant 0 : index
      %c0_39 = arith.constant 0 : index
      %c0_40 = arith.constant 0 : index
      %41 = vector.load %arg9[%c0_38, %c0_39, %c0_40] : memref<8x8x1xf32, #tpu.memory_space<vmem>>, vector<8x8x1xf32>
      %42 = tpu.reciprocal %41 {approx = true} : vector<8x8x1xf32> -> vector<8x8x1xf32>
      %c0_41 = arith.constant 0 : index
      %c0_42 = arith.constant 0 : index
      %c0_43 = arith.constant 0 : index
      %43 = vector.load %arg10[%c0_41, %c0_42, %c0_43] : memref<8x8x8xf32, #tpu.memory_space<vmem>>, vector<8x8x8xf32>
      %44 = vector.broadcast %42 : vector<8x8x1xf32> to vector<8x8x8xf32>
      %45 = arith.mulf %43, %44 : vector<8x8x8xf32>
      %46 = tpu.transpose %45, [1, 0, 2] : vector<8x8x8xf32> -> vector<8x8x8xf32>
      %47 = vector.shape_cast %46 : vector<8x8x8xf32> to vector<8x64xf32>
      %c0_44 = arith.constant 0 : index
      %c0_45 = arith.constant 0 : index
      %c0_46 = arith.constant 0 : index
      %48 = vector.load %arg7[%c0_44, %c0_45, %c0_46] : memref<1x8x64xf32, #tpu.memory_space<vmem>>, vector<1x8x64xf32>
      %49 = vector.shape_cast %48 : vector<1x8x64xf32> to vector<8x64xf32>
      %50 = vector.shape_cast %47 : vector<8x64xf32> to vector<1x8x64xf32>
      tpu.vector_store %arg7[%c0_44, %c0_45, %c0_46], %50 {strides = array<i32>} : memref<1x8x64xf32, #tpu.memory_space<vmem>>, vector<1x8x64xf32>,
    } else {
    }
    return
  }
  func.func @transform_0(%arg0: i32, %arg1: i32, %arg2: i32) -> (i32, i32, i32, i32) {
    %c0_i32 = arith.constant 0 : i32
    %c0_i32_0 = arith.constant 0 : i32
    %c0_i32_1 = arith.constant 0 : i32
    return %arg0, %c0_i32, %arg1, %c0_i32_0 : i32, i32, i32, i32
  }
  func.func @transform_1(%arg0: i32, %arg1: i32, %arg2: i32) -> (i32, i32, i32, i32) {
    %c0_i32 = arith.constant 0 : i32
    %c0_i32_0 = arith.constant 0 : i32
    %c0_i32_1 = arith.constant 0 : i32
    return %arg0, %c0_i32, %arg2, %c0_i32_0 : i32, i32, i32, i32
  }
  func.func @transform_2(%arg0: i32, %arg1: i32, %arg2: i32) -> (i32, i32, i32, i32) {
    %c0_i32 = arith.constant 0 : i32
    %c0_i32_0 = arith.constant 0 : i32
    %c0_i32_1 = arith.constant 0 : i32
    return %arg0, %c0_i32, %arg2, %c0_i32_0 : i32, i32, i32, i32
  }
  func.func @transform_3(%arg0: i32, %arg1: i32, %arg2: i32) -> (i32, i32, i32) {
    %c0_i32 = arith.constant 0 : i32
    %c0_i32_0 = arith.constant 0 : i32
    return %arg0, %c0_i32, %arg2 : i32, i32, i32
  }
  func.func @transform_4(%arg0: i32, %arg1: i32, %arg2: i32) -> (i32, i32, i32) {
    %c0_i32 = arith.constant 0 : i32
    %c0_i32_0 = arith.constant 0 : i32
    return %arg0, %arg1, %c0_i32 : i32, i32, i32
  }
}

</mosaic_0001>

<bundles_post_ra>
// kernel: tpu_custom_call.1
= control target key start
LH: loop header
LB: loop body
LE: loop exit
PB: predicated region body
PF: predicated region fallthrough
CT: control target
= control target key end

     0   :  { %9 = vsyncpa [#allocation6], 0  ;;  %s4740_s0 = inlined_call_operand.vmem [shape: bf16[2,8,8,8], index: 0, kind: input, shape index: {}]   ;;  %s4741_s1 = inlined_call_operand.vmem [shape: bf16[2,8,128,8], index: 1, kind: input, shape index: {}]   ;;  %s4742_s2 = inlined_call_operand.vmem [shape: bf16[2,8,128,8], index: 2, kind: input, shape index: {}]   ;;  %s4743_s3 = inlined_call_operand.vmem [shape: f32[2,1,128], index: 3, kind: input, shape index: {}]   ;;  %s4744_s4 = inlined_call_operand.hbm [shape: f32[2,8,64], index: 4, kind: output, shape index: {}]  }
   0x1   :  { %11 = vsyncpa [#allocation6 + $0x1], 0  ;;  %s3968_s15 = smov 0   ;;  %s3970_s16 = smov 0  }
   0x2   :  { %s3972_s17 = smov 0   ;;  %s3974_s18 = smov 0  }
   0x3   :  { %s3976_s19 = smov 0   ;;  %s3978_s20 = smov 0  }
   0x4 LB: > { %s2975_s21 = sadd.s32 4294967295, %s3927_s20   ;;  %s2976_s22 = sadd.s32 4294967294, %s3927_s20   ;;  %s3927_s20 = sphi %s3978_s20, %s17_s20   ;;  %s3923_s19 = sphi %s3976_s19, %s4751_s19   ;;  %s3919_s18 = sphi %s3974_s18, %s4750_s18   ;;  %s3915_s17 = sphi %s3972_s17, %s4749_s17   ;;  %s3911_s16 = sphi %s3970_s16, %s4748_s16   ;;  %s3907_s15 = sphi %s3968_s15, %s4747_s15  }
   0x5   : > { %s36_s23 = sadd.s32 1, %s3923_s19  ;;  %s157_s24 = sadd.s32 1, %s3915_s17 }
   0x6   : > { %p38_p0 = scmp.ge.s32.totalorder %s36_s23, 2  ;;  %p167_p1 = scmp.ne.s32.totalorder %s3915_s17, %s3911_s16 }
   0x7   : > { %p168_p2 = scmp.eq.s32.totalorder %s2975_s21, 1  ;;  %p173_p3 = scmp.ne.s32.totalorder %s3911_s16, %s3907_s15 }
   0x8   : > { %s4753_s23 = smov (%p38_p0, %s36_s23), 0  ;;  %p174_p5 = scmp.eq.s32.totalorder %s2976_s22, 1 }
   0x9   : > { %p4008_p4 = por %p168_p2, %p167_p1  ;;  %s152_s26 = ssub.s32 %s3923_s19, %s4753_s23 }
   0xa   : > { %p2979_p6 = scmp.ge.s32.totalorder %s3927_s20, 1  ;;  %p155_p7 = scmp.eq.s32.totalorder %s152_s26, 0 }
   0xb   : > { %p4015_p8 = por %p174_p5, %p173_p3  ;;  %p238_p9 = scmp.lt.s32.totalorder %s3927_s20, 3 }
   0xc   : > { %s4021_s28 = scalar_select %p155_p7, %s3915_s17, %s157_s24  }
   0xd   : > { %p239_p10 = pnand %p2979_p6, %p238_p9 }
   0xe   : > { %p291_p11 = scmp.lt.s32.totalorder (!%p239_p10), %s3919_s18, 1  ;;  %vm347_vm0 = vcmask (!%p239_p10), 64512   ;;  %v3929_v0 = vmov (!%p239_p10), 0.0   ;;  %vm3930_vm1 = vmmov (!%p239_p10), 0   ;;  %vm330_vm2 = vcmask (!%p239_p10), 7168   ;;  %s3935_s26 = smov (!%p239_p10), 16  }
   0xf   : > { %242 = sbr.rel (%p239_p10) target bundleno = 1234 (0x4d2), region = 36  ;;  %3283 = vmatprep.subr.bf16.mxu0 (!%p239_p10), %v3929_v0  ;;  %3303 = vmatprep.subr.bf16.mxu1 (!%p239_p10), %v3929_v0  ;;  %348 = vst.msk [vmem:[#allocation4] sm:$0xff] (!%p239_p10), %vm347_vm0, %v3929_v0  ;;  %349 = vst.msk [vmem:[#allocation4 + $0x8] sm:$0xff] (!%p239_p10), %vm347_vm0, %v3929_v0  ;;  %s3938_s5 = smov (!%p239_p10), 40   ;;  %vm2821_vm3 = vcmask (!%p239_p10), 130048   ;;  %vm2823_vm4 = vcmask (!%p239_p10), 195584  }
  0x10   : > { %350 = vst.msk [vmem:[#allocation4 + $0x10] sm:$0xff] (!%p239_p10), %vm347_vm0, %v3929_v0  ;;  %351 = vst.msk [vmem:[#allocation4 + $0x18] sm:$0xff] (!%p239_p10), %vm347_vm0, %v3929_v0  ;;  %3299 = vmatprep.mubr.msk.bf16.mxu0 (!%p239_p10), %vm3930_vm1, %v3929_v0  ;;  %3319 = vmatprep.mubr.msk.bf16.mxu1 (!%p239_p10), %vm3930_vm1, %v3929_v0  ;;  %s3939_s6 = smov (!%p239_p10), 32   ;;  %s288_s9 = sand.u32 (!%p239_p10), 1, %s3911_s16   ;;  %vm2825_vm5 = vcmask (!%p239_p10), 261120   ;;  %vm2827_vm6 = vcmask (!%p239_p10), 326656  }
  0x11   : > { %352 = vst.msk [vmem:[#allocation4 + $0x20] sm:$0xff] (!%p239_p10), %vm347_vm0, %v3929_v0  ;;  %353 = vst.msk [vmem:[#allocation4 + $0x28] sm:$0xff] (!%p239_p10), %vm347_vm0, %v3929_v0  ;;  %s2980_s10 = sshll.u32 (!%p239_p10), %s288_s9, 3  ;;  %vm2829_vm7 = vcmask (!%p239_p10), 392192   ;;  %vm2831_vm8 = vcmask (!%p239_p10), 457728   ;;  %vm2833_vm9 = vcmask (!%p239_p10), 523264  }
  0x12   : > { %354 = vst.msk [vmem:[#allocation4 + $0x30] sm:$0xff] (!%p239_p10), %vm347_vm0, %v3929_v0  ;;  %355 = vst.msk [vmem:[#allocation4 + $0x38] sm:$0xff] (!%p239_p10), %vm347_vm0, %v3929_v0  ;;  %s290_s12 = scalar_lea.vmem (!%p239_p10), [#allocation5], %s2980_s10 }
  0x13   : > { %339 = vst.msk [vmem:[#allocation3] sm:$0xff] (!%p239_p10), %vm330_vm2, %v3929_v0  ;;  %340 = vst.msk [vmem:[#allocation3 + $0x8] sm:$0xff] (!%p239_p10), %vm330_vm2, %v3929_v0  ;;  %s2850_s13 = sshll.u32 (!%p239_p10), %s290_s12, 4  ;;  %s4695_s13 = int_to_ptr.vmem [resolvable:$true] %s2850_s13 }
  0x14   : > { %341 = vst.msk [vmem:[#allocation3 + $0x10] sm:$0xff] (!%p239_p10), %vm330_vm2, %v3929_v0  ;;  %342 = vst.msk [vmem:[#allocation3 + $0x18] sm:$0xff] (!%p239_p10), %vm330_vm2, %v3929_v0 }
  0x15   : > { %343 = vst.msk [vmem:[#allocation3 + $0x20] sm:$0xff] (!%p239_p10), %vm330_vm2, %v3929_v0  ;;  %344 = vst.msk [vmem:[#allocation3 + $0x28] sm:$0xff] (!%p239_p10), %vm330_vm2, %v3929_v0 }
  0x16   : > { %s4043_s29 = scalar_select %p291_p11, %s3919_s18, 1  ;;  %345 = vst.msk [vmem:[#allocation3 + $0x30] sm:$0xff] %vm330_vm2, %v3929_v0  ;;  %346 = vst.msk [vmem:[#allocation3 + $0x38] sm:$0xff] %vm330_vm2, %v3929_v0 }
  0x18   : > { %s3137_s30 = sshll.u32 %s4043_s29, 9  ;;  %s3136_s8 = sshll.u32 %s4043_s29, 5 }
  0x19   : > { %s4055_s7 = scalar_lea.vmem %s4741_s1, %s3137_s30  ;;  %s4108_s11 = scalar_lea.vmem %s4740_s0, %s3136_s8 }
  0x1a   : > { %v3673_v1 = vld [vmem:[%s4055_s7] sm:$0xff]   ;;  %v3675_v5 = vld [vmem:[%s4055_s7 + $0x8] sm:$0xff]   ;;  %v3677_v9 = vld [vmem:[%s4055_s7 + $0x10] sm:$0xff]   ;;  %s4118_s14 = scalar_lea.vmem %s4742_s2, %s3137_s30  ;;  %s324_s24 = scalar_lea.vmem %s4743_s3, %s4043_s29 }
  0x1b   : > { %v3674_v2 = vld [vmem:[%s4055_s7 + $0x40] sm:$0xff]   ;;  %v672_v3 = vsel %vm347_vm0, %v3673_v1, 0  ;;  %v3676_v6 = vld [vmem:[%s4055_s7 + $0x48] sm:$0xff]   ;;  %v675_v7 = vsel %vm347_vm0, %v3675_v5, 0  ;;  %v3678_v10 = vld [vmem:[%s4055_s7 + $0x50] sm:$0xff]   ;;  %v678_v11 = vsel %vm347_vm0, %v3677_v9, 0 }
  0x1c   : > { %3284 = vmatpush3.bf16.xpose.msra.mxu0 %v672_v3  ;;  %v779_v4 = vsel %vm347_vm0, %v3674_v2, 0  ;;  %v782_v8 = vsel %vm347_vm0, %v3676_v6, 0  ;;  %v785_v12 = vsel %vm347_vm0, %v3678_v10, 0  ;;  %v3679_v13 = vld [vmem:[%s4055_s7 + $0x18] sm:$0xff]   ;;  %v3681_v17 = vld [vmem:[%s4055_s7 + $0x20] sm:$0xff]   ;;  %v3683_v21 = vld [vmem:[%s4055_s7 + $0x28] sm:$0xff]  }
  0x1d   : > { %3304 = vmatpush3.bf16.xpose.msra.mxu1 %v779_v4  ;;  %3285 = vmatprep.subr.bf16.mxu0 %v3929_v0  ;;  %v3680_v14 = vld [vmem:[%s4055_s7 + $0x58] sm:$0xff]   ;;  %v681_v15 = vsel %vm347_vm0, %v3679_v13, 0  ;;  %v3682_v18 = vld [vmem:[%s4055_s7 + $0x60] sm:$0xff]   ;;  %v684_v19 = vsel %vm347_vm0, %v3681_v17, 0  ;;  %v3684_v22 = vld [vmem:[%s4055_s7 + $0x68] sm:$0xff]   ;;  %v687_v23 = vsel %vm347_vm0, %v3683_v21, 0 }
  0x1e   : > { %3305 = vmatprep.subr.bf16.mxu1 %v3929_v0  ;;  %v788_v16 = vsel %vm347_vm0, %v3680_v14, 0  ;;  %v791_v20 = vsel %vm347_vm0, %v3682_v18, 0  ;;  %v794_v24 = vsel %vm347_vm0, %v3684_v22, 0  ;;  %v3685_v25 = vld [vmem:[%s4055_s7 + $0x30] sm:$0xff]   ;;  %v3687_v29 = vld [vmem:[%s4055_s7 + $0x38] sm:$0xff]   ;;  %v3689_v32 = vld [vmem:[%s4055_s7 + $0x80] sm:$0xff]  }
  0x1f   : > { %v3686_v26 = vld [vmem:[%s4055_s7 + $0x70] sm:$0xff]   ;;  %v690_v27 = vsel %vm347_vm0, %v3685_v25, 0  ;;  %v3688_v30 = vld [vmem:[%s4055_s7 + $0x78] sm:$0xff]   ;;  %v693_v31 = vsel %vm347_vm0, %v3687_v29, 0  ;;  %v886_v34 = vsel %vm347_vm0, %v3689_v32, 0  ;;  %v3690_v35 = vld [vmem:[%s4055_s7 + $0xc0] sm:$0xff]  }
  0x20   : > { %v797_v28 = vsel %vm347_vm0, %v3686_v26, 0  ;;  %v800_v33 = vsel %vm347_vm0, %v3688_v30, 0  ;;  %v356_v36 = vld [vmem:[%s4108_s11] sm:$0xf]  ;;  %v357_v37 = vld [vmem:[%s4108_s11 + $0x4] sm:$0xf] }
  0x21   : > { %v993_v38 = vsel %vm347_vm0, %v3690_v35, 0  ;;  %v3691_v39 = vld [vmem:[%s4055_s7 + $0x88] sm:$0xff]   ;;  %v3693_v43 = vld [vmem:[%s4055_s7 + $0x90] sm:$0xff]   ;;  %v3695_v47 = vld [vmem:[%s4055_s7 + $0x98] sm:$0xff]   ;;  %s3936_s29 = smov 8   ;;  %s3937_s30 = smov 24  }
  0x22   : > { %v3692_v40 = vld [vmem:[%s4055_s7 + $0xc8] sm:$0xff]   ;;  %v889_v41 = vsel %vm347_vm0, %v3691_v39, 0  ;;  %v3694_v44 = vld [vmem:[%s4055_s7 + $0xd0] sm:$0xff]   ;;  %v892_v45 = vsel %vm347_vm0, %v3693_v43, 0  ;;  %v3696_v48 = vld [vmem:[%s4055_s7 + $0xd8] sm:$0xff]   ;;  %v895_v49 = vsel %vm347_vm0, %v3695_v47, 0 }
  0x23   : > { %v996_v42 = vsel %vm347_vm0, %v3692_v40, 0  ;;  %v999_v46 = vsel %vm347_vm0, %v3694_v44, 0  ;;  %v1002_v50 = vsel %vm347_vm0, %v3696_v48, 0  ;;  %v3697_v51 = vld [vmem:[%s4055_s7 + $0xa0] sm:$0xff]   ;;  %v3699_v55 = vld [vmem:[%s4055_s7 + $0xa8] sm:$0xff]   ;;  %v3701_v59 = vld [vmem:[%s4055_s7 + $0xb0] sm:$0xff]  }
  0x24   : > { %3286 = vmatpush3.bf16.xpose.msra.mxu0 %v675_v7  ;;  %v3698_v52 = vld [vmem:[%s4055_s7 + $0xe0] sm:$0xff]   ;;  %v898_v53 = vsel %vm347_vm0, %v3697_v51, 0  ;;  %v3700_v56 = vld [vmem:[%s4055_s7 + $0xe8] sm:$0xff]   ;;  %v901_v57 = vsel %vm347_vm0, %v3699_v55, 0  ;;  %v3702_v60 = vld [vmem:[%s4055_s7 + $0xf0] sm:$0xff]   ;;  %v904_v61 = vsel %vm347_vm0, %v3701_v59, 0 }
  0x25   : > { %3306 = vmatpush3.bf16.xpose.msra.mxu1 %v782_v8  ;;  %3287 = vmatprep.subr.bf16.mxu0 %v3929_v0  ;;  %v1005_v54 = vsel %vm347_vm0, %v3698_v52, 0  ;;  %v1008_v58 = vsel %vm347_vm0, %v3700_v56, 0  ;;  %v1011_v62 = vsel %vm347_vm0, %v3702_v60, 0  ;;  %v3703_v63 = vld [vmem:[%s4055_s7 + $0xb8] sm:$0xff]   ;;  %v3705_v4 = vld [vmem:[%s4055_s7 + $0x100] sm:$0xff]   ;;  %v3707_v10 = vld [vmem:[%s4055_s7 + $0x108] sm:$0xff]  }
  0x26   : > { %3307 = vmatprep.subr.bf16.mxu1 %v3929_v0  ;;  %v3704_v1 = vld [vmem:[%s4055_s7 + $0xf8] sm:$0xff]   ;;  %v907_v2 = vsel %vm347_vm0, %v3703_v63, 0  ;;  %v3706_v5 = vld [vmem:[%s4055_s7 + $0x140] sm:$0xff]   ;;  %v358_v6 = vld [vmem:[%s4108_s11 + $0x8] sm:$0xf]  ;;  %v1100_v8 = vsel %vm347_vm0, %v3705_v4, 0 }
  0x27   : > { %v1014_v3 = vsel %vm347_vm0, %v3704_v1, 0  ;;  %v359_v7 = vld [vmem:[%s4108_s11 + $0xc] sm:$0xf]  ;;  %v1207_v9 = vsel %vm347_vm0, %v3706_v5, 0  ;;  %v3709_v14 = vld [vmem:[%s4055_s7 + $0x110] sm:$0xff]   ;;  %v3711_v18 = vld [vmem:[%s4055_s7 + $0x118] sm:$0xff]  }
  0x28   : > { %v3713_v22 = vld [vmem:[%s4055_s7 + $0x120] sm:$0xff]   ;;  %v3715_v26 = vld [vmem:[%s4055_s7 + $0x128] sm:$0xff]   ;;  %v3717_v30 = vld [vmem:[%s4055_s7 + $0x130] sm:$0xff]   ;;  %s3941_s8 = smov 48  }
  0x29   : > { %v1118_v32 = vsel %vm347_vm0, %v3717_v30, 0  ;;  %v3720_v35 = vld [vmem:[%s4055_s7 + $0x178] sm:$0xff]   ;;  %v3722_v39 = vld [vmem:[%s4055_s7 + $0x1c0] sm:$0xff]   ;;  %v360_v40 = vld [vmem:[%s4108_s11 + $0x10] sm:$0xf] }
  0x2a   : > { %v1421_v43 = vsel %vm347_vm0, %v3722_v39, 0  ;;  %v3723_v44 = vld [vmem:[%s4055_s7 + $0x188] sm:$0xff]   ;;  %v3725_v48 = vld [vmem:[%s4055_s7 + $0x190] sm:$0xff]   ;;  %v3727_v52 = vld [vmem:[%s4055_s7 + $0x198] sm:$0xff]  }
  0x2b   : > { %v3729_v56 = vld [vmem:[%s4055_s7 + $0x1a0] sm:$0xff]   ;;  %v3731_v60 = vld [vmem:[%s4055_s7 + $0x1a8] sm:$0xff]   ;;  %v3733_v1 = vld [vmem:[%s4055_s7 + $0x1b0] sm:$0xff]  }
  0x2c   : > { %3288 = vmatpush3.bf16.xpose.msra.mxu0 %v678_v11  ;;  %v3708_v11 = vld [vmem:[%s4055_s7 + $0x148] sm:$0xff]   ;;  %v3735_v5 = vld [vmem:[%s4055_s7 + $0x1b8] sm:$0xff]  }
  0x2d   : > { %3308 = vmatpush3.bf16.xpose.msra.mxu1 %v785_v12  ;;  %3289 = vmatprep.subr.bf16.mxu0 %v3929_v0  ;;  %v1103_v12 = vsel %vm347_vm0, %v3707_v10, 0  ;;  %v1210_v13 = vsel %vm347_vm0, %v3708_v11, 0  ;;  %v363_v10 = vld [vmem:[%s4108_s11 + $0x1c] sm:$0xf]  ;;  %v4298_v11 = vld [vmem:[%s324_s24] ss:$0 sm:$0xff] }
  0x2e   : > { %3309 = vmatprep.subr.bf16.mxu1 %v3929_v0  ;;  %s3849_s24 = scalar_lea.vmem %s4695_s13, 128 }
  0x2f   : > { %p3850_p12 = scmp.ne.s32.totalorder %s4695_s13, %s3849_s24 }
  0x31   : > { %p3851_p13 = pnand %p3850_p12, %p4008_p4 }
  0x33   : > { %p3852_p0 = pneg %p3851_p13 }
  0x34   : > { %3290 = vmatpush3.bf16.xpose.msra.mxu0 %v681_v15  ;;  %v3710_v15 = vld [vmem:[%s4055_s7 + $0x150] sm:$0xff]  }
  0x35   : > { %3310 = vmatpush3.bf16.xpose.msra.mxu1 %v788_v16  ;;  %3291 = vmatprep.subr.bf16.mxu0 %v3929_v0  ;;  %v1106_v16 = vsel %vm347_vm0, %v3709_v14, 0  ;;  %v1213_v17 = vsel %vm347_vm0, %v3710_v15, 0 }
  0x36   : > { %3311 = vmatprep.subr.bf16.mxu1 %v3929_v0 }
  0x3c   : > { %3292 = vmatpush3.bf16.xpose.msra.mxu0 %v684_v19  ;;  %v3712_v19 = vld [vmem:[%s4055_s7 + $0x158] sm:$0xff]  }
  0x3d   : > { %3312 = vmatpush3.bf16.xpose.msra.mxu1 %v791_v20  ;;  %3293 = vmatprep.subr.bf16.mxu0 %v3929_v0  ;;  %v1109_v20 = vsel %vm347_vm0, %v3711_v18, 0  ;;  %v1216_v21 = vsel %vm347_vm0, %v3712_v19, 0 }
  0x3e   : > { %3313 = vmatprep.subr.bf16.mxu1 %v3929_v0 }
  0x44   : > { %3294 = vmatpush3.bf16.xpose.msra.mxu0 %v687_v23  ;;  %v3714_v23 = vld [vmem:[%s4055_s7 + $0x160] sm:$0xff]  }
  0x45   : > { %3314 = vmatpush3.bf16.xpose.msra.mxu1 %v794_v24  ;;  %3295 = vmatprep.subr.bf16.mxu0 %v3929_v0  ;;  %v1112_v24 = vsel %vm347_vm0, %v3713_v22, 0  ;;  %v1219_v25 = vsel %vm347_vm0, %v3714_v23, 0  ;;  %v3931_v22 = vmov -inf   ;;  %v3932_v23 = vmov 0  }
  0x46   : > { %3315 = vmatprep.subr.bf16.mxu1 %v3929_v0  ;;  %331 = vst.msk [vmem:[#allocation2] sm:$0xff] %vm330_vm2, %v3931_v22  ;;  %332 = vst.msk [vmem:[#allocation2 + $0x8] sm:$0xff] %vm330_vm2, %v3931_v22  ;;  %3672 = vset.pattern.permute.xlu1 %v3932_v23 }
  0x47   : > { %333 = vst.msk [vmem:[#allocation2 + $0x10] sm:$0xff] %vm330_vm2, %v3931_v22  ;;  %334 = vst.msk [vmem:[#allocation2 + $0x18] sm:$0xff] %vm330_vm2, %v3931_v22  ;;  %3671 = vset.pattern.permute.xlu0 %v3932_v23 }
  0x48   : > { %335 = vst.msk [vmem:[#allocation2 + $0x20] sm:$0xff] %vm330_vm2, %v3931_v22  ;;  %336 = vst.msk [vmem:[#allocation2 + $0x28] sm:$0xff] %vm330_vm2, %v3931_v22 }
  0x49   : > { %337 = vst.msk [vmem:[#allocation2 + $0x30] sm:$0xff] %vm330_vm2, %v3931_v22  ;;  %338 = vst.msk [vmem:[#allocation2 + $0x38] sm:$0xff] %vm330_vm2, %v3931_v22 }
  0x4c   : > { %3296 = vmatpush3.bf16.xpose.msra.mxu0 %v690_v27  ;;  %v3716_v27 = vld [vmem:[%s4055_s7 + $0x168] sm:$0xff]  }
  0x4d   : > { %3316 = vmatpush3.bf16.xpose.msra.mxu1 %v797_v28  ;;  %3297 = vmatprep.subr.bf16.mxu0 %v3929_v0  ;;  %v1115_v28 = vsel %vm347_vm0, %v3715_v26, 0  ;;  %v1222_v29 = vsel %vm347_vm0, %v3716_v27, 0 }
  0x4e   : > { %3317 = vmatprep.subr.bf16.mxu1 %v3929_v0 }
  0x54   : > { %3298 = vmatpush3.bf16.xpose.msra.mxu0 %v693_v31  ;;  %v3718_v31 = vld [vmem:[%s4055_s7 + $0x170] sm:$0xff]  }
  0x55   : > { %3318 = vmatpush3.bf16.xpose.msra.mxu1 %v800_v33  ;;  %3323 = vmatprep.subr.bf16.mxu0 %v3929_v0  ;;  %v1225_v33 = vsel %vm347_vm0, %v3718_v31, 0 }
  0x56   : > { %3343 = vmatprep.subr.bf16.mxu1 %v3929_v0 }
  0x5b   : > { %3300 = vmatmul.mubr.msk.bf16.vlgmr.msra.gmra.mrb[0].mxu0 %vm347_vm0, %v356_v36 }
  0x5c   : > { %3320 = vmatmul.mubr.msk.bf16.vlgmr.msra.gmra.mrb[0].mxu1 %vm347_vm0, %v357_v37  ;;  %3324 = vmatpush3.bf16.xpose.msra.mxu0 %v886_v34  ;;  %v3719_v34 = vld [vmem:[%s4055_s7 + $0x138] sm:$0xff]   ;;  %v1228_v37 = vsel %vm347_vm0, %v3720_v35, 0  ;;  %v3738_v35 = vld [vmem:[%s4118_s14] sm:$0xff]  }
  0x5d   : > { %3344 = vmatpush3.bf16.xpose.msra.mxu1 %v993_v38  ;;  %3325 = vmatprep.subr.bf16.mxu0 %v3929_v0  ;;  %v1121_v36 = vsel %vm347_vm0, %v3719_v34, 0  ;;  %v3721_v38 = vld [vmem:[%s4055_s7 + $0x180] sm:$0xff]  }
  0x5e   : > { %3345 = vmatprep.subr.bf16.mxu1 %v3929_v0  ;;  %3339 = vmatprep.mubr.msk.bf16.mxu0 %vm3930_vm1, %v3929_v0  ;;  %v3737_v34 = vld [vmem:[%s4118_s14 + $0x40] sm:$0xff]  }
  0x5f   : > { %3359 = vmatprep.mubr.msk.bf16.mxu1 %vm3930_vm1, %v3929_v0 }
  0x64   : > { %3326 = vmatpush3.bf16.xpose.msra.mxu0 %v889_v41  ;;  %v361_v41 = vld [vmem:[%s4108_s11 + $0x14] sm:$0xf] }
  0x65   : > { %3346 = vmatpush3.bf16.xpose.msra.mxu1 %v996_v42  ;;  %3327 = vmatprep.subr.bf16.mxu0 %v3929_v0  ;;  %v1314_v42 = vsel %vm347_vm0, %v3721_v38, 0 }
  0x66   : > { %3347 = vmatprep.subr.bf16.mxu1 %v3929_v0 }
  0x6c   : > { %3328 = vmatpush3.bf16.xpose.msra.mxu0 %v892_v45  ;;  %v3724_v45 = vld [vmem:[%s4055_s7 + $0x1c8] sm:$0xff]  }
  0x6d   : > { %3348 = vmatpush3.bf16.xpose.msra.mxu1 %v999_v46  ;;  %3329 = vmatprep.subr.bf16.mxu0 %v3929_v0  ;;  %v1317_v46 = vsel %vm347_vm0, %v3723_v44, 0  ;;  %v1424_v47 = vsel %vm347_vm0, %v3724_v45, 0 }
  0x6e   : > { %3349 = vmatprep.subr.bf16.mxu1 %v3929_v0 }
  0x74   : > { %3330 = vmatpush3.bf16.xpose.msra.mxu0 %v895_v49  ;;  %v3726_v49 = vld [vmem:[%s4055_s7 + $0x1d0] sm:$0xff]  }
  0x75   : > { %3350 = vmatpush3.bf16.xpose.msra.mxu1 %v1002_v50  ;;  %3331 = vmatprep.subr.bf16.mxu0 %v3929_v0  ;;  %v1320_v50 = vsel %vm347_vm0, %v3725_v48, 0  ;;  %v1427_v51 = vsel %vm347_vm0, %v3726_v49, 0  ;;  %v4356_v48 = vld [vmem:[#allocation2] sm:$0xff] }
  0x76   : > { %3351 = vmatprep.subr.bf16.mxu1 %v3929_v0 }
  0x7c   : > { %3332 = vmatpush3.bf16.xpose.msra.mxu0 %v898_v53  ;;  %v3728_v53 = vld [vmem:[%s4055_s7 + $0x1d8] sm:$0xff]  }
  0x7d   : > { %3352 = vmatpush3.bf16.xpose.msra.mxu1 %v1005_v54  ;;  %3333 = vmatprep.subr.bf16.mxu0 %v3929_v0  ;;  %v1323_v54 = vsel %vm347_vm0, %v3727_v52, 0  ;;  %v1430_v55 = vsel %vm347_vm0, %v3728_v53, 0  ;;  %v4362_v52 = vld [vmem:[#allocation2 + $0x8] sm:$0xff]  ;;  %v3742_v53 = vld [vmem:[%s4118_s14 + $0x10] sm:$0xff]  }
  0x7e   : > { %3353 = vmatprep.subr.bf16.mxu1 %v3929_v0 }
  0x84   : > { %3334 = vmatpush3.bf16.xpose.msra.mxu0 %v901_v57  ;;  %v3730_v57 = vld [vmem:[%s4055_s7 + $0x1e0] sm:$0xff]  }
  0x85   : > { %3354 = vmatpush3.bf16.xpose.msra.mxu1 %v1008_v58  ;;  %3335 = vmatprep.subr.bf16.mxu0 %v3929_v0  ;;  %v1326_v58 = vsel %vm347_vm0, %v3729_v56, 0  ;;  %v1433_v59 = vsel %vm347_vm0, %v3730_v57, 0  ;;  %v3743_v56 = vld [vmem:[%s4118_s14 + $0x58] sm:$0xff]  }
  0x86   : > { %3355 = vmatprep.subr.bf16.mxu1 %v3929_v0 }
  0x8c   : > { %3336 = vmatpush3.bf16.xpose.msra.mxu0 %v904_v61  ;;  %v3732_v61 = vld [vmem:[%s4055_s7 + $0x1e8] sm:$0xff]  }
  0x8d   : > { %3356 = vmatpush3.bf16.xpose.msra.mxu1 %v1011_v62  ;;  %3337 = vmatprep.subr.bf16.mxu0 %v3929_v0  ;;  %v1329_v62 = vsel %vm347_vm0, %v3731_v60, 0  ;;  %v1436_v63 = vsel %vm347_vm0, %v3732_v61, 0  ;;  %v3745_v60 = vld [vmem:[%s4118_s14 + $0x60] sm:$0xff]  }
  0x8e   : > { %3357 = vmatprep.subr.bf16.mxu1 %v3929_v0  ;;  %v3746_v61 = vld [vmem:[%s4118_s14 + $0x20] sm:$0xff]  }
  0x94   : > { %3338 = vmatpush3.bf16.xpose.msra.mxu0 %v907_v2  ;;  %v3734_v2 = vld [vmem:[%s4055_s7 + $0x1f0] sm:$0xff]  }
  0x95   : > { %3358 = vmatpush3.bf16.xpose.msra.mxu1 %v1014_v3  ;;  %3363 = vmatprep.subr.bf16.mxu0 %v3929_v0  ;;  %v1332_v3 = vsel %vm347_vm0, %v3733_v1, 0  ;;  %v1439_v4 = vsel %vm347_vm0, %v3734_v2, 0  ;;  %v3749_v1 = vld [vmem:[%s4118_s14 + $0x70] sm:$0xff]  }
  0x96   : > { %3383 = vmatprep.subr.bf16.mxu1 %v3929_v0  ;;  %v3750_v2 = vld [vmem:[%s4118_s14 + $0x30] sm:$0xff]  }
  0x9b   : > { %3340 = vmatmul.mubr.msk.bf16.vlgmr.msra.gmra.mrb[4].mxu0 %vm347_vm0, %v358_v6  ;;  %v3736_v6 = vld [vmem:[%s4055_s7 + $0x1f8] sm:$0xff]   ;;  %s3940_s7 = smov 56  }
  0x9c   : > { %3360 = vmatmul.mubr.msk.bf16.vlgmr.msra.gmra.mrb[4].mxu1 %vm347_vm0, %v359_v7  ;;  %3364 = vmatpush3.bf16.xpose.msra.mxu0 %v1100_v8  ;;  %v1335_v7 = vsel %vm347_vm0, %v3735_v5, 0  ;;  %v1442_v8 = vsel %vm347_vm0, %v3736_v6, 0 }
  0x9d   : > { %3384 = vmatpush3.bf16.xpose.msra.mxu1 %v1207_v9  ;;  %3365 = vmatprep.subr.bf16.mxu0 %v3929_v0  ;;  %v362_v9 = vld [vmem:[%s4108_s11 + $0x18] sm:$0xf]  ;;  %s3133_s11 = sshll.u32 %s3919_s18, 7  ;;  %s2836_s18 = scalar_lea.sflag [#allocation6], %s288_s9 }
  0x9e   : > { %3385 = vmatprep.subr.bf16.mxu1 %v3929_v0  ;;  %3379 = vmatprep.mubr.msk.bf16.mxu0 %vm3930_vm1, %v3929_v0  ;;  %s4693_s22 = scalar_lea.hbm %s4744_s4, %s3133_s11 }
  0x9f   : > { %3399 = vmatprep.mubr.msk.bf16.mxu1 %vm3930_vm1, %v3929_v0 }
  0xa4   : > { %3366 = vmatpush3.bf16.xpose.msra.mxu0 %v1103_v12 }
  0xa5   : > { %3386 = vmatpush3.bf16.xpose.msra.mxu1 %v1210_v13  ;;  %3367 = vmatprep.subr.bf16.mxu0 %v3929_v0 }
  0xa6   : > { %3387 = vmatprep.subr.bf16.mxu1 %v3929_v0 }
  0xac   : > { %3368 = vmatpush3.bf16.xpose.msra.mxu0 %v1106_v16 }
  0xad   : > { %3388 = vmatpush3.bf16.xpose.msra.mxu1 %v1213_v17  ;;  %3369 = vmatprep.subr.bf16.mxu0 %v3929_v0 }
  0xae   : > { %3389 = vmatprep.subr.bf16.mxu1 %v3929_v0 }
  0xb4   : > { %3370 = vmatpush3.bf16.xpose.msra.mxu0 %v1109_v20 }
  0xb5   : > { %3390 = vmatpush3.bf16.xpose.msra.mxu1 %v1216_v21  ;;  %3371 = vmatprep.subr.bf16.mxu0 %v3929_v0 }
  0xb6   : > { %3391 = vmatprep.subr.bf16.mxu1 %v3929_v0 }
  0xbc   : > { %3372 = vmatpush3.bf16.xpose.msra.mxu0 %v1112_v24 }
  0xbd   : > { %3392 = vmatpush3.bf16.xpose.msra.mxu1 %v1219_v25  ;;  %3373 = vmatprep.subr.bf16.mxu0 %v3929_v0 }
  0xbe   : > { %3393 = vmatprep.subr.bf16.mxu1 %v3929_v0 }
  0xc4   : > { %3374 = vmatpush3.bf16.xpose.msra.mxu0 %v1115_v28 }
  0xc5   : > { %3394 = vmatpush3.bf16.xpose.msra.mxu1 %v1222_v29  ;;  %3375 = vmatprep.subr.bf16.mxu0 %v3929_v0 }
  0xc6   : > { %3395 = vmatprep.subr.bf16.mxu1 %v3929_v0 }
  0xcc   : > { %3376 = vmatpush3.bf16.xpose.msra.mxu0 %v1118_v32 }
  0xcd   : > { %3396 = vmatpush3.bf16.xpose.msra.mxu1 %v1225_v33  ;;  %3377 = vmatprep.subr.bf16.mxu0 %v3929_v0 }
  0xce   : > { %3397 = vmatprep.subr.bf16.mxu1 %v3929_v0 }
  0xd4   : > { %3378 = vmatpush3.bf16.xpose.msra.mxu0 %v1121_v36  ;;  %v3739_v36 = vld [vmem:[%s4118_s14 + $0x48] sm:$0xff]  }
  0xd5   : > { %3398 = vmatpush3.bf16.xpose.msra.mxu1 %v1228_v37  ;;  %3403 = vmatprep.subr.bf16.mxu0 %v3929_v0  ;;  %v3740_v37 = vld [vmem:[%s4118_s14 + $0x8] sm:$0xff]  }
  0xd6   : > { %3423 = vmatprep.subr.bf16.mxu1 %v3929_v0 }
  0xdb   : > { %3380 = vmatmul.mubr.msk.bf16.vlgmr.msra.gmra.mrb[8].mxu0 %vm347_vm0, %v360_v40 }
  0xdc   : > { %3400 = vmatmul.mubr.msk.bf16.vlgmr.msra.gmra.mrb[8].mxu1 %vm347_vm0, %v361_v41  ;;  %3404 = vmatpush3.bf16.xpose.msra.mxu0 %v1314_v42 }
  0xdd   : > { %3424 = vmatpush3.bf16.xpose.msra.mxu1 %v1421_v43  ;;  %3405 = vmatprep.subr.bf16.mxu0 %v3929_v0 }
  0xde   : > { %3425 = vmatprep.subr.bf16.mxu1 %v3929_v0  ;;  %3419 = vmatprep.mubr.msk.bf16.mxu0 %vm3930_vm1, %v3929_v0 }
  0xdf   : > { %3439 = vmatprep.mubr.msk.bf16.mxu1 %vm3930_vm1, %v3929_v0 }
  0xe4   : > { %3406 = vmatpush3.bf16.xpose.msra.mxu0 %v1317_v46 }
  0xe5   : > { %3426 = vmatpush3.bf16.xpose.msra.mxu1 %v1424_v47  ;;  %3407 = vmatprep.subr.bf16.mxu0 %v3929_v0 }
  0xe6   : > { %3427 = vmatprep.subr.bf16.mxu1 %v3929_v0 }
  0xec   : > { %3408 = vmatpush3.bf16.xpose.msra.mxu0 %v1320_v50  ;;  %v3741_v50 = vld [vmem:[%s4118_s14 + $0x50] sm:$0xff]  }
  0xed   : > { %3428 = vmatpush3.bf16.xpose.msra.mxu1 %v1427_v51  ;;  %3409 = vmatprep.subr.bf16.mxu0 %v3929_v0 }
  0xee   : > { %3429 = vmatprep.subr.bf16.mxu1 %v3929_v0 }
  0xf4   : > { %3410 = vmatpush3.bf16.xpose.msra.mxu0 %v1323_v54 }
  0xf5   : > { %3430 = vmatpush3.bf16.xpose.msra.mxu1 %v1430_v55  ;;  %3411 = vmatprep.subr.bf16.mxu0 %v3929_v0 }
  0xf6   : > { %3431 = vmatprep.subr.bf16.mxu1 %v3929_v0 }
  0xfc   : > { %3412 = vmatpush3.bf16.xpose.msra.mxu0 %v1326_v58  ;;  %v3744_v58 = vld [vmem:[%s4118_s14 + $0x18] sm:$0xff]  }
  0xfd   : > { %3432 = vmatpush3.bf16.xpose.msra.mxu1 %v1433_v59  ;;  %3413 = vmatprep.subr.bf16.mxu0 %v3929_v0 }
  0xfe   : > { %3433 = vmatprep.subr.bf16.mxu1 %v3929_v0 }
 0x104   : > { %3414 = vmatpush3.bf16.xpose.msra.mxu0 %v1329_v62  ;;  %v3747_v62 = vld [vmem:[%s4118_s14 + $0x68] sm:$0xff]  }
 0x105   : > { %3434 = vmatpush3.bf16.xpose.msra.mxu1 %v1436_v63  ;;  %3415 = vmatprep.subr.bf16.mxu0 %v3929_v0  ;;  %v3748_v63 = vld [vmem:[%s4118_s14 + $0x28] sm:$0xff]  }
 0x106   : > { %3435 = vmatprep.subr.bf16.mxu1 %v3929_v0 }
 0x10c   : > { %3416 = vmatpush3.bf16.xpose.msra.mxu0 %v1332_v3  ;;  %v3751_v3 = vld [vmem:[%s4118_s14 + $0x78] sm:$0xff]  }
 0x10d   : > { %3436 = vmatpush3.bf16.xpose.msra.mxu1 %v1439_v4  ;;  %3417 = vmatprep.subr.bf16.mxu0 %v3929_v0  ;;  %v3752_v4 = vld [vmem:[%s4118_s14 + $0x38] sm:$0xff]  }
 0x10e   : > { %3437 = vmatprep.subr.bf16.mxu1 %v3929_v0 }
 0x114   : > { %3418 = vmatpush3.bf16.xpose.msra.mxu0 %v1335_v7 }
 0x115   : > { %3438 = vmatpush3.bf16.xpose.msra.mxu1 %v1442_v8  ;;  %3443 = vmatprep.subr.bf16.mxu0 %v3929_v0 }
 0x116   : > { %3463 = vmatprep.subr.bf16.mxu1 %v3929_v0 }
 0x11b   : > { %3420 = vmatmul.mubr.msk.bf16.vlgmr.msra.gmra.mrb[12].mxu0 %vm347_vm0, %v362_v9 }
 0x11c   : > { %3440 = vmatmul.mubr.msk.bf16.vlgmr.msra.gmra.mrb[12].mxu1 %vm347_vm0, %v363_v10  ;;  %3459 = vmatprep.mubr.msk.bf16.mxu0 %vm3930_vm1, %v3929_v0 }
 0x11d   : > { %3479 = vmatprep.mubr.msk.bf16.mxu1 %vm3930_vm1, %v3929_v0  ;;  %3464 = vmatpush3.bf16.msra.mxu1 %v3737_v34 }
 0x11e   : > { %3444 = vmatpush3.bf16.msra.mxu0 %v3738_v35  ;;  %3465 = vmatprep.subr.bf16.mxu1 %v3929_v0 }
 0x11f   : > { %3445 = vmatprep.subr.bf16.mxu0 %v3929_v0 }
 0x121   : > { %3466 = vmatpush3.bf16.msra.mxu1 %v3739_v36 }
 0x122   : > { %3446 = vmatpush3.bf16.msra.mxu0 %v3740_v37  ;;  %3467 = vmatprep.subr.bf16.mxu1 %v3929_v0 }
 0x123   : > { %3447 = vmatprep.subr.bf16.mxu0 %v3929_v0 }
 0x125   : > { %3468 = vmatpush3.bf16.msra.mxu1 %v3741_v50  ;;  %v3759_v50 = vld [vmem:[%s4118_s14 + $0xd0] sm:$0xff]  }
 0x126   : > { %3469 = vmatprep.subr.bf16.mxu1 %v3929_v0  ;;  %3448 = vmatpush3.bf16.msra.mxu0 %v3742_v53  ;;  %v3756_v53 = vld [vmem:[%s4118_s14 + $0x90] sm:$0xff]  }
 0x127   : > { %3449 = vmatprep.subr.bf16.mxu0 %v3929_v0 }
 0x129   : > { %3470 = vmatpush3.bf16.msra.mxu1 %v3743_v56  ;;  %v3758_v56 = vld [vmem:[%s4118_s14 + $0x98] sm:$0xff]  }
 0x12a   : > { %3471 = vmatprep.subr.bf16.mxu1 %v3929_v0  ;;  %3450 = vmatpush3.bf16.msra.mxu0 %v3744_v58  ;;  %v3763_v58 = vld [vmem:[%s4118_s14 + $0xe0] sm:$0xff]  }
 0x12b   : > { %3451 = vmatprep.subr.bf16.mxu0 %v3929_v0 }
 0x12d   : > { %3472 = vmatpush3.bf16.msra.mxu1 %v3745_v60  ;;  %v3760_v60 = vld [vmem:[%s4118_s14 + $0xa0] sm:$0xff]  }
 0x12e   : > { %v729_v12 = vpop.f32.mrb[0].mxu0  ;;  %3473 = vmatprep.subr.bf16.mxu1 %v3929_v0  ;;  %3452 = vmatpush3.bf16.msra.mxu0 %v3746_v61  ;;  %v3765_v61 = vld [vmem:[%s4118_s14 + $0xe8] sm:$0xff]  }
 0x12f   : > { %v4301_v13 = vadd.f32 %v4298_v11, %v729_v12  ;;  %v3301_v14 = vpop.f32.mrb[1].mxu0  ;;  %v836_v15 = vpop.f32.mrb[0].mxu1  ;;  %3453 = vmatprep.subr.bf16.mxu0 %v3929_v0 }
 0x130   : > { %v732_v16 = vpop.f32.mrb[2].mxu0  ;;  %v3321_v17 = vpop.f32.mrb[1].mxu1  ;;  %v4304_v18 = vadd.f32 %v4298_v11, %v836_v15 }
 0x131   : > { %1492 = vmax.xlane.f32.xlu0 %v4301_v13  ;;  %v3302_v19 = vpop.f32.mrb[3].mxu0  ;;  %v839_v20 = vpop.f32.mrb[2].mxu1  ;;  %3474 = vmatpush3.bf16.msra.mxu1 %v3747_v62  ;;  %v4408_v17 = vld [vmem:[#allocation2 + $0x10] sm:$0xff]  ;;  %v3762_v62 = vld [vmem:[%s4118_s14 + $0xa8] sm:$0xff]  }
 0x132   : > { %v3322_v21 = vpop.f32.mrb[3].mxu1  ;;  %3475 = vmatprep.subr.bf16.mxu1 %v3929_v0  ;;  %3454 = vmatpush3.bf16.msra.mxu0 %v3748_v63  ;;  %v3767_v63 = vld [vmem:[%s4118_s14 + $0xf0] sm:$0xff]  }
 0x133   : > { %3455 = vmatprep.subr.bf16.mxu0 %v3929_v0  ;;  %v4413_v21 = vld [vmem:[#allocation2 + $0x18] sm:$0xff] }
 0x135   : > { %1494 = vmax.xlane.f32.xlu0 %v4304_v18  ;;  %3476 = vmatpush3.bf16.msra.mxu1 %v3749_v1  ;;  %v3764_v1 = vld [vmem:[%s4118_s14 + $0xb0] sm:$0xff]  }
 0x136   : > { %3477 = vmatprep.subr.bf16.mxu1 %v3929_v0  ;;  %3456 = vmatpush3.bf16.msra.mxu0 %v3750_v2  ;;  %v3768_v2 = vld [vmem:[%s4118_s14 + $0xf8] sm:$0xff]  }
 0x137   : > { %3457 = vmatprep.subr.bf16.mxu0 %v3929_v0 }
 0x139   : > { %3478 = vmatpush3.bf16.msra.mxu1 %v3751_v3  ;;  %v3766_v3 = vld [vmem:[%s4118_s14 + $0xb8] sm:$0xff]  }
 0x13a   : > { %3503 = vmatprep.subr.bf16.mxu1 %v3929_v0  ;;  %3458 = vmatpush3.bf16.msra.mxu0 %v3752_v4  ;;  %v4490_v4 = vld [vmem:[#allocation2 + $0x30] sm:$0xff] }
 0x13b   : > { %3483 = vmatprep.subr.bf16.mxu0 %v3929_v0 }
 0x16e   : > { %v943_v24 = vpop.f32.mrb[4].mxu0 }
 0x16f   : > { %v4333_v25 = vadd.f32 %v4298_v11, %v943_v24  ;;  %v3341_v26 = vpop.f32.mrb[5].mxu0  ;;  %v1050_v27 = vpop.f32.mrb[4].mxu1 }
 0x170   : > { %v946_v28 = vpop.f32.mrb[6].mxu0  ;;  %v3361_v29 = vpop.f32.mrb[5].mxu1  ;;  %v4336_v30 = vadd.f32 %v4298_v11, %v1050_v27  ;;  %v4428_v26 = vld [vmem:[#allocation2 + $0x20] sm:$0xff]  ;;  %v4430_v27 = vld [vmem:[#allocation2 + $0x28] sm:$0xff] }
 0x171   : > { %v3342_v31 = vpop.f32.mrb[7].mxu0  ;;  %v1053_v32 = vpop.f32.mrb[6].mxu1  ;;  %1496 = vmax.xlane.f32.xlu1 %v4333_v25 }
 0x172   : > { %v3362_v33 = vpop.f32.mrb[7].mxu1 }
 0x175   : > { %1498 = vmax.xlane.f32.xlu1 %v4336_v30 }
 0x1ae   : > { %v1157_v38 = vpop.f32.mrb[8].mxu0 }
 0x1af   : > { %v4349_v39 = vadd.f32 %v4298_v11, %v1157_v38  ;;  %v1264_v40 = vpop.f32.mrb[8].mxu1  ;;  %v3381_v41 = vpop.f32.mrb[9].mxu0 }
 0x1b0   : > { %v4352_v42 = vadd.f32 %v4298_v11, %v1264_v40  ;;  %v1160_v43 = vpop.f32.mrb[10].mxu0  ;;  %v3401_v44 = vpop.f32.mrb[9].mxu1 }
 0x1b1   : > { %1500 = vmax.xlane.f32.xlu0 %v4349_v39  ;;  %v3382_v45 = vpop.f32.mrb[11].mxu0  ;;  %v1267_v46 = vpop.f32.mrb[10].mxu1  ;;  %v3755_v44 = vld [vmem:[%s4118_s14 + $0xc0] sm:$0xff]  }
 0x1b2   : > { %1502 = vmax.xlane.f32.xlu1 %v4352_v42  ;;  %v3402_v47 = vpop.f32.mrb[11].mxu1 }
 0x1b3   : > { %v3753_v47 = vld [vmem:[%s4118_s14 + $0x80] sm:$0xff]  }
 0x1be   : > { %v1493_v49 = vpop.xlane.xlu0 %1492 }
 0x1bf   : > { %v4360_v51 = vmax.f32 %v4356_v48, %v1493_v49  ;;  %v3757_v49 = vld [vmem:[%s4118_s14 + $0xc8] sm:$0xff]  }
 0x1c1   : > { %v1516_v54 = vsub.f32 %v4356_v48, %v4360_v51  ;;  %2437 = vst.msk [vmem:[#allocation2] sm:$0xff] %vm330_vm2, %v4360_v51 }
 0x1c2   : > { %v1495_v55 = vpop.xlane.xlu0 %1494 }
 0x1c3   : > { %v4372_v57 = vmax.f32 %v4362_v52, %v1495_v55  ;;  %v3761_v55 = vld [vmem:[%s4118_s14 + $0xd8] sm:$0xff]  }
 0x1c5   : > { %v1517_v59 = vsub.f32 %v4362_v52, %v4372_v57  ;;  %2438 = vst.msk [vmem:[#allocation2 + $0x8] sm:$0xff] %vm330_vm2, %v4372_v57  ;;  %1547 = vperm.xlu1 %3672, %v4372_v57   ;;  %v3794_v52 = vld [vmem:[%s4118_s14 + $0x1a8] sm:$0xff]  }
 0x1c6   : > { %v3797_v57 = vld [vmem:[%s4118_s14 + $0x1e8] sm:$0xff]  }
 0x1c7   : > { %1542 = vperm.xlu0 %3671, %v4360_v51  }
 0x1ee   : > { %v1371_v5 = vpop.f32.mrb[12].mxu0 }
 0x1ef   : > { %v4401_v6 = vadd.f32 %v4298_v11, %v1371_v5  ;;  %v3421_v7 = vpop.f32.mrb[13].mxu0  ;;  %v1478_v8 = vpop.f32.mrb[12].mxu1  ;;  %v4492_v5 = vld [vmem:[#allocation2 + $0x38] sm:$0xff] }
 0x1f0   : > { %v4404_v9 = vadd.f32 %v4298_v11, %v1478_v8  ;;  %v1374_v10 = vpop.f32.mrb[14].mxu0  ;;  %v3441_v12 = vpop.f32.mrb[13].mxu1 }
 0x1f1   : > { %v1481_v14 = vpop.f32.mrb[14].mxu1  ;;  %1504 = vmax.xlane.f32.xlu1 %v4401_v6  ;;  %v3422_v15 = vpop.f32.mrb[15].mxu0 }
 0x1f2   : > { %v3442_v16 = vpop.f32.mrb[15].mxu1  ;;  %1506 = vmax.xlane.f32.xlu0 %v4404_v9 }
 0x1fe   : > { %v1497_v19 = vpop.xlane.xlu1 %1496 }
 0x1ff   : > { %v4411_v20 = vmax.f32 %v4408_v17, %v1497_v19 }
 0x201   : > { %v1518_v11 = vsub.f32 %v4408_v17, %v4411_v20  ;;  %2439 = vst.msk [vmem:[#allocation2 + $0x10] sm:$0xff] %vm330_vm2, %v4411_v20 }
 0x202   : > { %1552 = vperm.xlu1 %3672, %v4411_v20   ;;  %v1499_v22 = vpop.xlane.xlu1 %1498 }
 0x203   : > { %v4421_v23 = vmax.f32 %v4413_v21, %v1499_v22 }
 0x205   : > { %v1519_v24 = vsub.f32 %v4413_v21, %v4421_v23  ;;  %2440 = vst.msk [vmem:[#allocation2 + $0x18] sm:$0xff] %vm330_vm2, %v4421_v23 }
 0x206   : > { %1557 = vperm.xlu1 %3672, %v4421_v23  }
 0x23e   : > { %v1501_v28 = vpop.xlane.xlu0 %1500 }
 0x23f   : > { %v1503_v29 = vpop.xlane.xlu1 %1502  ;;  %v4433_v31 = vmax.f32 %v4428_v26, %v1501_v28 }
 0x240   : > { %v4436_v32 = vmax.f32 %v4430_v27, %v1503_v29 }
 0x241   : > { %v1520_v33 = vsub.f32 %v4428_v26, %v4433_v31  ;;  %2441 = vst.msk [vmem:[#allocation2 + $0x20] sm:$0xff] %vm330_vm2, %v4433_v31  ;;  %1562 = vperm.xlu1 %3672, %v4433_v31  }
 0x242   : > { %v1521_v34 = vsub.f32 %v4430_v27, %v4436_v32  ;;  %2442 = vst.msk [vmem:[#allocation2 + $0x28] sm:$0xff] %vm330_vm2, %v4436_v32  ;;  %1567 = vperm.xlu0 %3671, %v4436_v32  }
 0x244   : > { %v1548_v35 = vpop.permute.xlu1 %1547  ;;  %v1534_v48 = vmul.f32 1.442695, %v1521_v34 }
 0x245   : > { %v1581_v36 = vsub.f32 %v4304_v18, %v1548_v35 }
 0x246   : > { %v1543_v37 = vpop.permute.xlu0 %1542 }
 0x247   : > { %v1590_v38 = vmul.f32 1.442695, %v1581_v36  ;;  %v1580_v40 = vsub.f32 %v4301_v13, %v1543_v37  ;;  %v3754_v13 = vld [vmem:[%s4118_s14 + $0x88] sm:$0xff]   ;;  %v3769_v37 = vld [vmem:[%s4118_s14 + $0x100] sm:$0xff]  }
 0x249   : > { %3801 = vpow2.f32 %v1590_v38  ;;  %v1588_v41 = vmul.f32 1.442695, %v1580_v40 }
 0x24b   : > { %3803 = vpow2.f32 %v1588_v41  ;;  %v3770_v41 = vld [vmem:[%s4118_s14 + $0x140] sm:$0xff]  }
 0x253   : > { %v3802_v43 = vpop.eup %3801 }
 0x254   : > { %v1710_v45 = vpack.c.bf16 %v3802_v43, %v3802_v43 }
 0x255   : > { %v4451_v46 = vpop.eup %3803 }
 0x256   : > { %3480 = vmatmul.mubr.bf16.vlgmr.msra.gmra.mrb[16].mxu1 %v1710_v45  ;;  %v1709_v18 = vpack.c.bf16 %v4451_v46, %v4451_v46  ;;  %v3774_v45 = vld [vmem:[%s4118_s14 + $0x150] sm:$0xff]  }
 0x257   : > { %3504 = vmatpush3.bf16.msra.mxu1 %v3755_v44  ;;  %3519 = vmatprep.mubr.msk.bf16.mxu1 %vm3930_vm1, %v3929_v0  ;;  %v3773_v44 = vld [vmem:[%s4118_s14 + $0x110] sm:$0xff]  }
 0x258   : > { %3460 = vmatmul.mubr.bf16.vlgmr.msra.gmra.mrb[16].mxu0 %v1709_v18  ;;  %3505 = vmatprep.subr.bf16.mxu1 %v3929_v0  ;;  %v3776_v18 = vld [vmem:[%s4118_s14 + $0x158] sm:$0xff]  }
 0x259   : > { %3484 = vmatpush3.bf16.msra.mxu0 %v3753_v47  ;;  %3499 = vmatprep.mubr.msk.bf16.mxu0 %vm3930_vm1, %v3929_v0  ;;  %v3775_v47 = vld [vmem:[%s4118_s14 + $0x118] sm:$0xff]  }
 0x25a   : > { %3485 = vmatprep.subr.bf16.mxu0 %v3929_v0 }
 0x25b   : > { %3506 = vmatpush3.bf16.msra.mxu1 %v3757_v49  ;;  %v3777_v49 = vld [vmem:[%s4118_s14 + $0x120] sm:$0xff]  }
 0x25c   : > { %3507 = vmatprep.subr.bf16.mxu1 %v3929_v0 }
 0x25d   : > { %3486 = vmatpush3.bf16.msra.mxu0 %v3754_v13  ;;  %v3778_v13 = vld [vmem:[%s4118_s14 + $0x160] sm:$0xff]  }
 0x25e   : > { %3487 = vmatprep.subr.bf16.mxu0 %v3929_v0 }
 0x25f   : > { %3508 = vmatpush3.bf16.msra.mxu1 %v3759_v50  ;;  %v3779_v50 = vld [vmem:[%s4118_s14 + $0x128] sm:$0xff]  }
 0x260   : > { %3509 = vmatprep.subr.bf16.mxu1 %v3929_v0 }
 0x261   : > { %1622 = vadd.xlane.f32.xlu0 %v3802_v43  ;;  %3488 = vmatpush3.bf16.msra.mxu0 %v3756_v53  ;;  %v3780_v53 = vld [vmem:[%s4118_s14 + $0x168] sm:$0xff]  }
 0x262   : > { %3489 = vmatprep.subr.bf16.mxu0 %v3929_v0 }
 0x263   : > { %3510 = vmatpush3.bf16.msra.mxu1 %v3761_v55  ;;  %v3781_v55 = vld [vmem:[%s4118_s14 + $0x130] sm:$0xff]  }
 0x264   : > { %3511 = vmatprep.subr.bf16.mxu1 %v3929_v0 }
 0x265   : > { %3490 = vmatpush3.bf16.msra.mxu0 %v3758_v56  ;;  %v3782_v56 = vld [vmem:[%s4118_s14 + $0x170] sm:$0xff]  }
 0x266   : > { %3491 = vmatprep.subr.bf16.mxu0 %v3929_v0 }
 0x267   : > { %3512 = vmatpush3.bf16.msra.mxu1 %v3763_v58  ;;  %v3783_v58 = vld [vmem:[%s4118_s14 + $0x138] sm:$0xff]  }
 0x268   : > { %3513 = vmatprep.subr.bf16.mxu1 %v3929_v0 }
 0x269   : > { %3492 = vmatpush3.bf16.msra.mxu0 %v3760_v60 }
 0x26a   : > { %3493 = vmatprep.subr.bf16.mxu0 %v3929_v0 }
 0x26b   : > { %3514 = vmatpush3.bf16.msra.mxu1 %v3765_v61 }
 0x26c   : > { %3515 = vmatprep.subr.bf16.mxu1 %v3929_v0 }
 0x26d   : > { %3494 = vmatpush3.bf16.msra.mxu0 %v3762_v62 }
 0x26e   : > { %3495 = vmatprep.subr.bf16.mxu0 %v3929_v0 }
 0x26f   : > { %3516 = vmatpush3.bf16.msra.mxu1 %v3767_v63 }
 0x270   : > { %3517 = vmatprep.subr.bf16.mxu1 %v3929_v0 }
 0x271   : > { %3496 = vmatpush3.bf16.msra.mxu0 %v3764_v1 }
 0x272   : > { %3497 = vmatprep.subr.bf16.mxu0 %v3929_v0 }
 0x273   : > { %3518 = vmatpush3.bf16.msra.mxu1 %v3768_v2 }
 0x274   : > { %3543 = vmatprep.subr.bf16.mxu1 %v3929_v0 }
 0x275   : > { %3498 = vmatpush3.bf16.msra.mxu0 %v3766_v3 }
 0x276   : > { %3523 = vmatprep.subr.bf16.mxu0 %v3929_v0 }
 0x27e   : > { %v1505_v7 = vpop.xlane.xlu1 %1504 }
 0x27f   : > { %v4495_v8 = vmax.f32 %v4490_v4, %v1505_v7  ;;  %v1507_v10 = vpop.xlane.xlu0 %1506  ;;  %v3785_v7 = vld [vmem:[%s4118_s14 + $0x180] sm:$0xff]  }
 0x280   : > { %v4498_v12 = vmax.f32 %v4492_v5, %v1507_v10 }
 0x281   : > { %v1522_v14 = vsub.f32 %v4490_v4, %v4495_v8  ;;  %2443 = vst.msk [vmem:[#allocation2 + $0x30] sm:$0xff] %vm330_vm2, %v4495_v8  ;;  %1572 = vperm.xlu1 %3672, %v4495_v8  }
 0x282   : > { %v1523_v15 = vsub.f32 %v4492_v5, %v4498_v12  ;;  %2444 = vst.msk [vmem:[#allocation2 + $0x38] sm:$0xff] %vm330_vm2, %v4498_v12  ;;  %v1553_v16 = vpop.permute.xlu1 %1552 }
 0x283   : > { %v1582_v19 = vsub.f32 %v4333_v25, %v1553_v16  ;;  %v3771_v25 = vld [vmem:[%s4118_s14 + $0x108] sm:$0xff]   ;;  %v1536_v51 = vmul.f32 1.442695, %v1522_v14  ;;  %v1604_v14 = vld [vmem:[#allocation3] sm:$0xff] }
 0x285   : > { %v1592_v22 = vmul.f32 1.442695, %v1582_v19  ;;  %1577 = vperm.xlu1 %3672, %v4498_v12   ;;  %v3787_v19 = vld [vmem:[%s4118_s14 + $0x1c0] sm:$0xff]  }
 0x286   : > { %v1558_v28 = vpop.permute.xlu1 %1557 }
 0x287   : > { %3805 = vpow2.f32 %v1592_v22  ;;  %v1583_v29 = vsub.f32 %v4336_v30, %v1558_v28  ;;  %v3772_v30 = vld [vmem:[%s4118_s14 + $0x148] sm:$0xff]   ;;  %v3788_v28 = vld [vmem:[%s4118_s14 + $0x190] sm:$0xff]  }
 0x289   : > { %v1594_v35 = vmul.f32 1.442695, %v1583_v29  ;;  %v3791_v29 = vld [vmem:[%s4118_s14 + $0x1d0] sm:$0xff]  }
 0x28b   : > { %3807 = vpow2.f32 %v1594_v35  ;;  %v3790_v35 = vld [vmem:[%s4118_s14 + $0x198] sm:$0xff]  }
 0x291   : > { %v3806_v36 = vpop.eup %3805 }
 0x292   : > { %v1711_v38 = vpack.c.bf16 %v3806_v36, %v3806_v36 }
 0x294   : > { %3500 = vmatmul.mubr.bf16.vlgmr.msra.gmra.mrb[20].mxu0 %v1711_v38  ;;  %v3792_v38 = vld [vmem:[%s4118_s14 + $0x1a0] sm:$0xff]  }
 0x295   : > { %v3808_v40 = vpop.eup %3807  ;;  %3524 = vmatpush3.bf16.msra.mxu0 %v3769_v37  ;;  %3539 = vmatprep.mubr.msk.bf16.mxu0 %vm3930_vm1, %v3929_v0  ;;  %v3793_v37 = vld [vmem:[%s4118_s14 + $0x1d8] sm:$0xff]  }
 0x296   : > { %v1712_v43 = vpack.c.bf16 %v3808_v40, %v3808_v40  ;;  %3525 = vmatprep.subr.bf16.mxu0 %v3929_v0 }
 0x298   : > { %3520 = vmatmul.mubr.bf16.vlgmr.msra.gmra.mrb[20].mxu1 %v1712_v43  ;;  %v1605_v43 = vld [vmem:[#allocation3 + $0x8] sm:$0xff] }
 0x299   : > { %3544 = vmatpush3.bf16.msra.mxu1 %v3770_v41  ;;  %3526 = vmatpush3.bf16.msra.mxu0 %v3771_v25  ;;  %v3799_v41 = vld [vmem:[%s4118_s14 + $0x1f0] sm:$0xff]  }
 0x29a   : > { %3545 = vmatprep.subr.bf16.mxu1 %v3929_v0  ;;  %3527 = vmatprep.subr.bf16.mxu0 %v3929_v0 }
 0x29b   : > { %3559 = vmatprep.mubr.msk.bf16.mxu1 %vm3930_vm1, %v3929_v0 }
 0x29d   : > { %3546 = vmatpush3.bf16.msra.mxu1 %v3772_v30  ;;  %3528 = vmatpush3.bf16.msra.mxu0 %v3773_v44  ;;  %v3798_v30 = vld [vmem:[%s4118_s14 + $0x1b8] sm:$0xff]  }
 0x29e   : > { %3547 = vmatprep.subr.bf16.mxu1 %v3929_v0  ;;  %3529 = vmatprep.subr.bf16.mxu0 %v3929_v0  ;;  %v3800_v44 = vld [vmem:[%s4118_s14 + $0x1f8] sm:$0xff]  }
 0x2a1   : > { %3548 = vmatpush3.bf16.msra.mxu1 %v3774_v45  ;;  %3530 = vmatpush3.bf16.msra.mxu0 %v3775_v47 }
 0x2a2   : > { %3549 = vmatprep.subr.bf16.mxu1 %v3929_v0  ;;  %3531 = vmatprep.subr.bf16.mxu0 %v3929_v0 }
 0x2a5   : > { %3550 = vmatpush3.bf16.msra.mxu1 %v3776_v18  ;;  %3532 = vmatpush3.bf16.msra.mxu0 %v3777_v49 }
 0x2a6   : > { %3551 = vmatprep.subr.bf16.mxu1 %v3929_v0  ;;  %3533 = vmatprep.subr.bf16.mxu0 %v3929_v0 }
 0x2a9   : > { %1620 = vadd.xlane.f32.xlu1 %v4451_v46  ;;  %3552 = vmatpush3.bf16.msra.mxu1 %v3778_v13  ;;  %v3784_v46 = vld [vmem:[%s4118_s14 + $0x178] sm:$0xff]  }
 0x2aa   : > { %3553 = vmatprep.subr.bf16.mxu1 %v3929_v0  ;;  %3534 = vmatpush3.bf16.msra.mxu0 %v3779_v50 }
 0x2ab   : > { %3535 = vmatprep.subr.bf16.mxu0 %v3929_v0 }
 0x2ad   : > { %1624 = vadd.xlane.f32.xlu1 %v3806_v36  ;;  %3554 = vmatpush3.bf16.msra.mxu1 %v3780_v53  ;;  %v1526_v36 = vmul.f32 1.442695, %v1517_v59  ;;  %v3796_v59 = vld [vmem:[%s4118_s14 + $0x1b0] sm:$0xff]  }
 0x2ae   : > { %3555 = vmatprep.subr.bf16.mxu1 %v3929_v0  ;;  %3536 = vmatpush3.bf16.msra.mxu0 %v3781_v55 }
 0x2af   : > { %3537 = vmatprep.subr.bf16.mxu0 %v3929_v0 }
 0x2b1   : > { %1626 = vadd.xlane.f32.xlu1 %v3808_v40  ;;  %3556 = vmatpush3.bf16.msra.mxu1 %v3782_v56  ;;  %v3795_v40 = vld [vmem:[%s4118_s14 + $0x1e0] sm:$0xff]  }
 0x2b2   : > { %3557 = vmatprep.subr.bf16.mxu1 %v3929_v0  ;;  %3538 = vmatpush3.bf16.msra.mxu0 %v3783_v58 }
 0x2b3   : > { %3563 = vmatprep.subr.bf16.mxu0 %v3929_v0 }
 0x2b5   : > { %3558 = vmatpush3.bf16.msra.mxu1 %v3784_v46 }
 0x2b6   : > { %3583 = vmatprep.subr.bf16.mxu1 %v3929_v0 }
 0x2c0   : > { %v1563_v60 = vpop.permute.xlu1 %1562 }
 0x2c1   : > { %v1568_v61 = vpop.permute.xlu0 %1567  ;;  %v1584_v62 = vsub.f32 %v4349_v39, %v1563_v60  ;;  %v3786_v39 = vld [vmem:[%s4118_s14 + $0x188] sm:$0xff]  }
 0x2c2   : > { %v1585_v63 = vsub.f32 %v4352_v42, %v1568_v61  ;;  %v3789_v42 = vld [vmem:[%s4118_s14 + $0x1c8] sm:$0xff]   ;;  %v1524_v61 = vmul.f32 1.442695, %v1516_v54  ;;  %v1538_v54 = vmul.f32 1.442695, %v1523_v15 }
 0x2c3   : > { %v1596_v1 = vmul.f32 1.442695, %v1584_v62  ;;  %v1532_v62 = vmul.f32 1.442695, %v1520_v33 }
 0x2c4   : > { %v1598_v2 = vmul.f32 1.442695, %v1585_v63 }
 0x2c5   : > { %3809 = vpow2.f32 %v1596_v1 }
 0x2c6   : > { %3811 = vpow2.f32 %v1598_v2  ;;  %v1606_v2 = vld [vmem:[#allocation3 + $0x10] sm:$0xff] }
 0x2c7   : > { %3813 = vpow2.f32 %v1526_v36 }
 0x2cf   : > { %v3810_v3 = vpop.eup %3809 }
 0x2d0   : > { %v3812_v10 = vpop.eup %3811  ;;  %1628 = vadd.xlane.f32.xlu0 %v3810_v3  ;;  %v1713_v16 = vpack.c.bf16 %v3810_v3, %v3810_v3 }
 0x2d1   : > { %1630 = vadd.xlane.f32.xlu1 %v3812_v10  ;;  %v1714_v22 = vpack.c.bf16 %v3812_v10, %v3812_v10  ;;  %v3814_v25 = vpop.eup %3813 }
 0x2d2   : > { %3540 = vmatmul.mubr.bf16.vlgmr.msra.gmra.mrb[24].mxu0 %v1713_v16  ;;  %v1613_v45 = vmul.f32 %v3814_v25, %v1605_v43  ;;  %v1607_v16 = vld [vmem:[#allocation3 + $0x18] sm:$0xff] }
 0x2d3   : > { %3560 = vmatmul.mubr.bf16.vlgmr.msra.gmra.mrb[24].mxu1 %v1714_v22  ;;  %3564 = vmatpush3.bf16.msra.mxu0 %v3785_v7 }
 0x2d4   : > { %3565 = vmatprep.subr.bf16.mxu0 %v3929_v0  ;;  %3584 = vmatpush3.bf16.msra.mxu1 %v3787_v19 }
 0x2d5   : > { %3585 = vmatprep.subr.bf16.mxu1 %v3929_v0  ;;  %3579 = vmatprep.mubr.msk.bf16.mxu0 %vm3930_vm1, %v3929_v0 }
 0x2d6   : > { %3599 = vmatprep.mubr.msk.bf16.mxu1 %vm3930_vm1, %v3929_v0 }
 0x2d7   : > { %3566 = vmatpush3.bf16.msra.mxu0 %v3786_v39 }
 0x2d8   : > { %3567 = vmatprep.subr.bf16.mxu0 %v3929_v0  ;;  %3586 = vmatpush3.bf16.msra.mxu1 %v3789_v42 }
 0x2d9   : > { %3587 = vmatprep.subr.bf16.mxu1 %v3929_v0 }
 0x2db   : > { %3568 = vmatpush3.bf16.msra.mxu0 %v3788_v28 }
 0x2dc   : > { %3569 = vmatprep.subr.bf16.mxu0 %v3929_v0  ;;  %3588 = vmatpush3.bf16.msra.mxu1 %v3791_v29 }
 0x2dd   : > { %3589 = vmatprep.subr.bf16.mxu1 %v3929_v0 }
 0x2df   : > { %3570 = vmatpush3.bf16.msra.mxu0 %v3790_v35 }
 0x2e0   : > { %3571 = vmatprep.subr.bf16.mxu0 %v3929_v0  ;;  %3590 = vmatpush3.bf16.msra.mxu1 %v3793_v37 }
 0x2e1   : > { %3591 = vmatprep.subr.bf16.mxu1 %v3929_v0 }
 0x2e3   : > { %3572 = vmatpush3.bf16.msra.mxu0 %v3792_v38 }
 0x2e4   : > { %3573 = vmatprep.subr.bf16.mxu0 %v3929_v0  ;;  %3592 = vmatpush3.bf16.msra.mxu1 %v3795_v40  ;;  %v1608_v40 = vld [vmem:[#allocation3 + $0x20] sm:$0xff] }
 0x2e5   : > { %3593 = vmatprep.subr.bf16.mxu1 %v3929_v0 }
 0x2e7   : > { %3574 = vmatpush3.bf16.msra.mxu0 %v3794_v52  ;;  %v1609_v52 = vld [vmem:[#allocation3 + $0x28] sm:$0xff] }
 0x2e8   : > { %3575 = vmatprep.subr.bf16.mxu0 %v3929_v0  ;;  %3594 = vmatpush3.bf16.msra.mxu1 %v3797_v57 }
 0x2e9   : > { %3595 = vmatprep.subr.bf16.mxu1 %v3929_v0 }
 0x2eb   : > { %3576 = vmatpush3.bf16.msra.mxu0 %v3796_v59 }
 0x2ec   : > { %3577 = vmatprep.subr.bf16.mxu0 %v3929_v0  ;;  %3596 = vmatpush3.bf16.msra.mxu1 %v3799_v41 }
 0x2ed   : > { %3597 = vmatprep.subr.bf16.mxu1 %v3929_v0 }
 0x2ee   : > { %v1623_v47 = vpop.xlane.xlu0 %1622 }
 0x2ef   : > { %v1637_v18 = vadd.f32 %v1623_v47, %v1613_v45  ;;  %3578 = vmatpush3.bf16.msra.mxu0 %v3798_v30 }
 0x2f0   : > { %3598 = vmatpush3.bf16.msra.mxu1 %v3800_v44 }
 0x2f1   : > { %1646 = vst.msk [vmem:[#allocation3 + $0x8] sm:$0xff] %vm330_vm2, %v1637_v18 }
 0x2f8   : > { %v2449_v21 = vld [vmem:[#allocation3 + $0x8] sm:$0xff] }
 0x300   : > { %v1573_v49 = vpop.permute.xlu1 %1572 }
 0x301   : > { %v1586_v13 = vsub.f32 %v4401_v6, %v1573_v49  ;;  %v1528_v6 = vmul.f32 1.442695, %v1518_v11 }
 0x303   : > { %v1600_v50 = vmul.f32 1.442695, %v1586_v13 }
 0x304   : > { %v1578_v53 = vpop.permute.xlu1 %1577 }
 0x305   : > { %3815 = vpow2.f32 %v1600_v50  ;;  %v1587_v55 = vsub.f32 %v4404_v9, %v1578_v53  ;;  %v1530_v9 = vmul.f32 1.442695, %v1519_v24 }
 0x307   : > { %v1602_v56 = vmul.f32 1.442695, %v1587_v55 }
 0x309   : > { %3817 = vpow2.f32 %v1602_v56 }
 0x30a   : > { %3819 = vpow2.f32 %v1524_v61 }
 0x30b   : > { %3821 = vpow2.f32 %v1528_v6  ;;  %v1611_v6 = vld [vmem:[#allocation3 + $0x38] sm:$0xff] }
 0x30c   : > { %3823 = vpow2.f32 %v1530_v9 }
 0x30d   : > { %3825 = vpow2.f32 %v1532_v62 }
 0x30e   : > { %3827 = vpow2.f32 %v1534_v48 }
 0x30f   : > { %v3816_v58 = vpop.eup %3815  ;;  %3829 = vpow2.f32 %v1536_v51 }
 0x310   : > { %1632 = vadd.xlane.f32.xlu0 %v3816_v58  ;;  %v1715_v46 = vpack.c.bf16 %v3816_v58, %v3816_v58  ;;  %3831 = vpow2.f32 %v1538_v54  ;;  %v1653_v54 = vld [vmem:[#allocation4] sm:$0xff] }
 0x311   : > { %3833 = vrcp.f32 %v2449_v21 }
 0x312   : > { %3580 = vmatmul.mubr.bf16.vlgmr.msra.gmra.mrb[28].mxu0 %v1715_v46 }
 0x313   : > { %v3818_v0 = vpop.eup %3817 }
 0x314   : > { %1634 = vadd.xlane.f32.xlu1 %v3818_v0  ;;  %v1716_v60 = vpack.c.bf16 %v3818_v0, %v3818_v0  ;;  %v3820_v17 = vpop.eup %3819  ;;  %v1610_v0 = vld [vmem:[#allocation3 + $0x30] sm:$0xff] }
 0x315   : > { %v3822_v20 = vpop.eup %3821  ;;  %v1612_v63 = vmul.f32 %v3820_v17, %v1604_v14  ;;  %v1656_v14 = vld [vmem:[#allocation4 + $0x18] sm:$0xff] }
 0x316   : > { %3600 = vmatmul.mubr.bf16.vlgmr.msra.gmra.mrb[28].mxu1 %v1716_v60  ;;  %v3824_v11 = vpop.eup %3823  ;;  %v1614_v7 = vmul.f32 %v3822_v20, %v1606_v2 }
 0x317   : > { %v3826_v31 = vpop.eup %3825  ;;  %v1615_v22 = vmul.f32 %v3824_v11, %v1607_v16 }
 0x318   : > { %v3828_v34 = vpop.eup %3827  ;;  %v1616_v57 = vmul.f32 %v3826_v31, %v1608_v40 }
 0x319   : > { %v3830_v8 = vpop.eup %3829  ;;  %v1617_v41 = vmul.f32 %v3828_v34, %v1609_v52 }
 0x31a   : > { %v4616_v12 = vpop.eup %3831  ;;  %v1618_v60 = vmul.f32 %v3830_v8, %v1610_v0 }
 0x31b   : > { %v3834_v15 = vpop.eup %3833  ;;  %v1619_v62 = vmul.f32 %v4616_v12, %v1611_v6 }
 0x325   : > { %1668 = vperm.xlu1 %3672, %v3814_v25  }
 0x326   : > { %1663 = vperm.xlu0 %3671, %v3820_v17   ;;  %v1654_v17 = vld [vmem:[#allocation4 + $0x8] sm:$0xff] }
 0x329   : > { %v4612_v23 = vpop.f32.mrb[16].mxu1  ;;  %1673 = vperm.xlu1 %3672, %v3822_v20  }
 0x32a   : > { %v3481_v24 = vpop.f32.mrb[17].mxu1  ;;  %1678 = vperm.xlu0 %3671, %v3824_v11  }
 0x32b   : > { %v4614_v26 = vpop.f32.mrb[16].mxu0  ;;  %v1890_v27 = vpop.f32.mrb[18].mxu1 }
 0x32c   : > { %v3461_v32 = vpop.f32.mrb[17].mxu0  ;;  %v3482_v33 = vpop.f32.mrb[19].mxu1 }
 0x32d   : > { %1683 = vperm.xlu1 %3672, %v3826_v31   ;;  %v1802_v4 = vpop.f32.mrb[18].mxu0 }
 0x32e   : > { %1688 = vperm.xlu0 %3671, %v3828_v34   ;;  %v3462_v5 = vpop.f32.mrb[19].mxu0 }
 0x331   : > { %1693 = vperm.xlu1 %3672, %v3830_v8  }
 0x332   : > { %1698 = vperm.xlu0 %3671, %v4616_v12  }
 0x336   : > { %2479 = vperm.xlu0 %3671, %v3834_v15   ;;  %v1621_v1 = vpop.xlane.xlu1 %1620  ;;  %v1655_v15 = vld [vmem:[#allocation4 + $0x10] sm:$0xff] }
 0x337   : > { %v1636_v3 = vadd.f32 %v1621_v1, %v1612_v63 }
 0x339   : > { %1645 = vst.msk [vmem:[#allocation3] sm:$0xff] %vm330_vm2, %v1636_v3 }
 0x33a   : > { %v1625_v10 = vpop.xlane.xlu1 %1624 }
 0x33b   : > { %v1638_v19 = vadd.f32 %v1625_v10, %v1614_v7 }
 0x33d   : > { %1647 = vst.msk [vmem:[#allocation3 + $0x10] sm:$0xff] %vm330_vm2, %v1638_v19  ;;  %v1658_v19 = vld [vmem:[#allocation4 + $0x28] sm:$0xff] }
 0x33e   : > { %v1627_v39 = vpop.xlane.xlu1 %1626 }
 0x33f   : > { %v1639_v42 = vadd.f32 %v1627_v39, %v1615_v22 }
 0x340   : > { %v2448_v28 = vld [vmem:[#allocation3] sm:$0xff] }
 0x341   : > { %1648 = vst.msk [vmem:[#allocation3 + $0x18] sm:$0xff] %vm330_vm2, %v1639_v42  ;;  %3835 = vrcp.f32 %v2448_v28 }
 0x344   : > { %v2450_v29 = vld [vmem:[#allocation3 + $0x10] sm:$0xff] }
 0x345   : > { %3837 = vrcp.f32 %v2450_v29 }
 0x348   : > { %v2451_v35 = vld [vmem:[#allocation3 + $0x18] sm:$0xff] }
 0x349   : > { %3839 = vrcp.f32 %v2451_v35 }
 0x34b   : > { %v3836_v36 = vpop.eup %3835 }
 0x34c   : > { %2474 = vperm.xlu1 %3672, %v3836_v36  }
 0x34f   : > { %v3838_v37 = vpop.eup %3837 }
 0x350   : > { %2484 = vperm.xlu1 %3672, %v3838_v37  }
 0x353   : > { %v3840_v38 = vpop.eup %3839 }
 0x354   : > { %2489 = vperm.xlu0 %3671, %v3840_v38  }
 0x35d   : > { %v1629_v59 = vpop.xlane.xlu0 %1628 }
 0x35e   : > { %v1640_v25 = vadd.f32 %v1629_v59, %v1616_v57  ;;  %v1631_v43 = vpop.xlane.xlu1 %1630  ;;  %v3933_v59 = vmov 1983009808  }
 0x35f   : > { %v1641_v30 = vadd.f32 %v1631_v43, %v1617_v41  ;;  %v2523_v41 = vunpack.c.l.s4 %v3933_v59 }
 0x360   : > { %1649 = vst.msk [vmem:[#allocation3 + $0x20] sm:$0xff] %vm330_vm2, %v1640_v25  ;;  %v2525_v25 = vlaneseq }
 0x361   : > { %1650 = vst.msk [vmem:[#allocation3 + $0x28] sm:$0xff] %vm330_vm2, %v1641_v30  ;;  %v2524_v30 = vunpack.c.0.s8 %v2523_v41 }
 0x367   : > { %v1975_v44 = vpop.f32.mrb[20].mxu0  ;;  %v2452_v45 = vld [vmem:[#allocation3 + $0x20] sm:$0xff] }
 0x368   : > { %v3501_v47 = vpop.f32.mrb[21].mxu0  ;;  %3841 = vrcp.f32 %v2452_v45  ;;  %v2453_v18 = vld [vmem:[#allocation3 + $0x28] sm:$0xff] }
 0x369   : > { %v1978_v49 = vpop.f32.mrb[22].mxu0  ;;  %3843 = vrcp.f32 %v2453_v18  ;;  %v3934_v18 = vmov 1934713408  }
 0x36a   : > { %v3502_v13 = vpop.f32.mrb[23].mxu0  ;;  %v2587_v49 = vunpack.c.l.s4 %v3934_v18 }
 0x36b   : > { %v2063_v50 = vpop.f32.mrb[20].mxu1 }
 0x36c   : > { %v3521_v53 = vpop.f32.mrb[21].mxu1 }
 0x36d   : > { %v2066_v55 = vpop.f32.mrb[22].mxu1 }
 0x36e   : > { %v3522_v56 = vpop.f32.mrb[23].mxu1 }
 0x372   : > { %v3842_v58 = vpop.eup %3841 }
 0x373   : > { %v3844_v46 = vpop.eup %3843  ;;  %2494 = vperm.xlu1 %3672, %v3842_v58  }
 0x374   : > { %2499 = vperm.xlu0 %3671, %v3844_v46   ;;  %v2588_v46 = vunpack.c.0.s8 %v2587_v49 }
 0x39d   : > { %v1633_v61 = vpop.xlane.xlu0 %1632 }
 0x39e   : > { %v1642_v9 = vadd.f32 %v1633_v61, %v1618_v60 }
 0x3a0   : > { %1651 = vst.msk [vmem:[#allocation3 + $0x30] sm:$0xff] %vm330_vm2, %v1642_v9 }
 0x3a1   : > { %v1635_v48 = vpop.xlane.xlu1 %1634 }
 0x3a2   : > { %v1643_v51 = vadd.f32 %v1635_v48, %v1619_v62 }
 0x3a4   : > { %1652 = vst.msk [vmem:[#allocation3 + $0x38] sm:$0xff] %vm330_vm2, %v1643_v51 }
 0x3a5   : > { %v1664_v20 = vpop.permute.xlu0 %1663  ;;  %v1669_v21 = vpop.permute.xlu1 %1668 }
 0x3a6   : > { %v2239_v11 = vpop.f32.mrb[24].mxu1  ;;  %v1701_v24 = vmul.f32 %v1664_v20, %v1653_v54  ;;  %v1702_v27 = vmul.f32 %v1669_v21, %v1654_v17  ;;  %v2151_v31 = vpop.f32.mrb[24].mxu0 }
 0x3a7   : > { %v3541_v32 = vpop.f32.mrb[25].mxu0  ;;  %v3561_v33 = vpop.f32.mrb[25].mxu1  ;;  %v2454_v34 = vld [vmem:[#allocation3 + $0x30] sm:$0xff] }
 0x3a8   : > { %v2421_v4 = vadd.f32 %v4614_v26, %v1701_v24  ;;  %v2422_v5 = vadd.f32 %v4612_v23, %v1702_v27  ;;  %v2154_v8 = vpop.f32.mrb[26].mxu0  ;;  %v2242_v12 = vpop.f32.mrb[26].mxu1  ;;  %3845 = vrcp.f32 %v2454_v34  ;;  %v1657_v26 = vld [vmem:[#allocation4 + $0x20] sm:$0xff] }
 0x3a9   : > { %v3542_v63 = vpop.f32.mrb[27].mxu0  ;;  %v3562_v1 = vpop.f32.mrb[27].mxu1 }
 0x3aa   : > { %2429 = vst.msk [vmem:[#allocation4] sm:$0xff] %vm347_vm0, %v2421_v4  ;;  %2430 = vst.msk [vmem:[#allocation4 + $0x8] sm:$0xff] %vm347_vm0, %v2422_v5  ;;  %v1679_v2 = vpop.permute.xlu0 %1678  ;;  %v1674_v3 = vpop.permute.xlu1 %1673 }
 0x3ab   : > { %v1704_v7 = vmul.f32 %v1679_v2, %v1656_v14  ;;  %v1703_v10 = vmul.f32 %v1674_v3, %v1655_v15  ;;  %v2455_v16 = vld [vmem:[#allocation3 + $0x38] sm:$0xff]  ;;  %v1659_v15 = vld [vmem:[#allocation4 + $0x30] sm:$0xff] }
 0x3ac   : > { %3847 = vrcp.f32 %v2455_v16 }
 0x3ad   : > { %v2424_v23 = vadd.f32 %v2063_v50, %v1704_v7  ;;  %v2423_v22 = vadd.f32 %v1975_v44, %v1703_v10  ;;  %v2526_v44 = vshrl.u32 %v2525_v25, 7 }
 0x3ae   : > { %v1689_v39 = vpop.permute.xlu0 %1688  ;;  %v1684_v42 = vpop.permute.xlu1 %1683 }
 0x3af   : > { %2432 = vst.msk [vmem:[#allocation4 + $0x18] sm:$0xff] %vm347_vm0, %v2424_v23  ;;  %2431 = vst.msk [vmem:[#allocation4 + $0x10] sm:$0xff] %vm347_vm0, %v2423_v22  ;;  %v1706_v28 = vmul.f32 %v1689_v39, %v1658_v19  ;;  %v1705_v29 = vmul.f32 %v1684_v42, %v1657_v26  ;;  %v4637_v56 = vsub.s32 %v2524_v30, %v2526_v44 }
 0x3b0   : > { %v4639_v51 = vsub.s32 %v2588_v46, %v2526_v44 }
 0x3b1   : > { %v2426_v35 = vadd.f32 %v2239_v11, %v1706_v28  ;;  %v2425_v36 = vadd.f32 %v2151_v31, %v1705_v29  ;;  %v2464_v50 = vld [vmem:[#allocation4] sm:$0xff]  ;;  %v2465_v55 = vld [vmem:[#allocation4 + $0x8] sm:$0xff]  ;;  %v1660_v28 = vld [vmem:[#allocation4 + $0x38] sm:$0xff] }
 0x3b2   : > { %v3846_v37 = vpop.eup %3845  ;;  %v1694_v40 = vpop.permute.xlu1 %1693 }
 0x3b3   : > { %2434 = vst.msk [vmem:[#allocation4 + $0x28] sm:$0xff] %vm347_vm0, %v2426_v35  ;;  %2433 = vst.msk [vmem:[#allocation4 + $0x20] sm:$0xff] %vm347_vm0, %v2425_v36  ;;  %2504 = vperm.xlu1 %3672, %v3846_v37   ;;  %v4635_v52 = vpop.permute.xlu0 %1698  ;;  %v1707_v26 = vmul.f32 %v1694_v40, %v1659_v15 }
 0x3b4   : > { %v1708_v59 = vmul.f32 %v4635_v52, %v1660_v28 }
 0x3b6   : > { %v3848_v38 = vpop.eup %3847  ;;  %v2466_v47 = vld [vmem:[#allocation4 + $0x10] sm:$0xff]  ;;  %v2467_v58 = vld [vmem:[#allocation4 + $0x18] sm:$0xff] }
 0x3b7   : > { %2509 = vperm.xlu0 %3671, %v3848_v38   ;;  %v2480_v43 = vpop.permute.xlu0 %2479 }
 0x3b8   : > { %v2513_v60 = vmul.f32 %v2480_v43, %v2465_v55 }
 0x3cb   : > { %v2475_v57 = vpop.permute.xlu1 %2474 }
 0x3cc   : > { %v2512_v53 = vmul.f32 %v2475_v57, %v2464_v50 }
 0x3cf   : > { %v2485_v45 = vpop.permute.xlu1 %2484 }
 0x3d0   : > { %v2514_v13 = vmul.f32 %v2485_v45, %v2466_v47 }
 0x3d2   : > { %v2520_v61 = vcombine.low %v2512_v53, %v2514_v13  ;;  %v2521_v6 = vcombine.high %v2512_v53, %v2514_v13  ;;  %v2468_v53 = vld [vmem:[#allocation4 + $0x20] sm:$0xff] }
 0x3d3   : > { %v2490_v0 = vpop.permute.xlu0 %2489 }
 0x3d4   : > { %v2515_v9 = vmul.f32 %v2490_v0, %v2467_v58  ;;  %v2528_v54 = vrot.slane %v2520_v61, %v4637_v56  ;;  %v2535_v17 = vrot.slane %v2521_v6, %v4637_v56  ;;  %v2469_v58 = vld [vmem:[#allocation4 + $0x28] sm:$0xff] }
 0x3d6   : > { %v2536_v62 = vcombine.low %v2513_v60, %v2515_v9  ;;  %v2537_v48 = vcombine.high %v2513_v60, %v2515_v9 }
 0x3d8   : > { %v2544_v20 = vrot.slane %v2536_v62, %v4637_v56  ;;  %v2551_v21 = vrot.slane %v2537_v48, %v4637_v56 }
 0x3da   : > { %v2584_v11 = vcombine.low %v2528_v54, %v2544_v20  ;;  %v2585_v24 = vcombine.high %v2528_v54, %v2544_v20  ;;  %v2600_v27 = vcombine.low %v2535_v17, %v2551_v21  ;;  %v2601_v31 = vcombine.high %v2535_v17, %v2551_v21 }
 0x3dc   : > { %v2592_v32 = vrot.slane %v2584_v11, %v4639_v51  ;;  %v2599_v33 = vrot.slane %v2585_v24, %v4639_v51  ;;  %v2608_v34 = vrot.slane %v2600_v27, %v4639_v51  ;;  %v2615_v4 = vrot.slane %v2601_v31, %v4639_v51 }
 0x3de   : > { %v3124_v5 = vcombine.low %v2592_v32, %v2599_v33  ;;  %v3126_v8 = vcombine.high %v2592_v32, %v2599_v33  ;;  %v3128_v12 = vcombine.low %v2608_v34, %v2615_v4  ;;  %v3130_v14 = vcombine.high %v2608_v34, %v2615_v4 }
 0x3e0   : > { %v2664_v63 = vrot.slane %v3124_v5, %v4637_v56  ;;  %v2680_v1 = vrot.slane %v3126_v8, %v4637_v56  ;;  %v2696_v2 = vrot.slane %v3128_v12, %v4637_v56  ;;  %v2712_v3 = vrot.slane %v3130_v14, %v4637_v56 }
 0x3e2   : > { %v2721_v7 = vcombine.high %v2664_v63, %v2680_v1  ;;  %v2753_v10 = vcombine.high %v2696_v2, %v2712_v3  ;;  %v2720_v16 = vcombine.low %v2664_v63, %v2680_v1  ;;  %v2752_v19 = vcombine.low %v2696_v2, %v2712_v3 }
 0x3e4   : > { %v2735_v23 = vrot.slane %v2721_v7, %v4639_v51  ;;  %v2767_v22 = vrot.slane %v2753_v10, %v4639_v51  ;;  %v4656_v39 = vrot.slane %v2720_v16, %v4639_v51  ;;  %v4659_v42 = vrot.slane %v2752_v19, %v4639_v51 }
 0x3e5   : > { %v2327_v29 = vpop.f32.mrb[28].mxu0 }
 0x3e6   : > { %v2427_v35 = vadd.f32 %v2327_v29, %v1707_v26  ;;  %v3581_v36 = vpop.f32.mrb[29].mxu0  ;;  %v2786_v37 = vcombine.low %v2735_v23, %v2767_v22  ;;  %v2785_v38 = vcombine.high %v4656_v39, %v4659_v42  ;;  %v2784_v40 = vcombine.low %v4656_v39, %v4659_v42 }
 0x3e7   : > { %v2330_v57 = vpop.f32.mrb[30].mxu0  ;;  %v2787_v44 = vcombine.high %v2735_v23, %v2767_v22 }
 0x3e8   : > { %2435 = vst.msk [vmem:[#allocation4 + $0x30] sm:$0xff] %vm347_vm0, %v2427_v35  ;;  %2797 = vrot.lane.b32.xlu0 %v2786_v37, %s3935_s26  ;;  %2793 = vrot.lane.b32.xlu1 %v2785_v38, %s3936_s29  ;;  %v3582_v41 = vpop.f32.mrb[31].mxu0  ;;  %s3942_s26 = smov [#allocation5]  }
 0x3e9   : > { %v2415_v25 = vpop.f32.mrb[28].mxu1  ;;  %s3853_s29 = sshll.u32 %s3942_s26, 4  ;;  %s3854_s29 = int_to_ptr.vmem [resolvable:$false] %s3853_s29 }
 0x3ea   : > { %v2428_v43 = vadd.f32 %v2415_v25, %v1708_v59  ;;  %v3601_v30 = vpop.f32.mrb[29].mxu1  ;;  %p3856_p1 = scmp.lt.s32.totalorder %s4695_s13, %s3854_s29 }
 0x3eb   : > { %v2418_v45 = vpop.f32.mrb[30].mxu1 }
 0x3ec   : > { %2436 = vst.msk [vmem:[#allocation4 + $0x38] sm:$0xff] %vm347_vm0, %v2428_v43  ;;  %v3602_v47 = vpop.f32.mrb[31].mxu1  ;;  %2801 = vrot.lane.b32.xlu1 %v2787_v44, %s3937_s30  ;;  %s3855_s30 = scalar_lea.vmem %s3854_s29, 256 }
 0x3ed   : > { %p3857_p2 = scmp.lt.s32.totalorder %s3855_s30, %s3849_s24 }
 0x3ef   : > { %v2470_v13 = vld [vmem:[#allocation4 + $0x30] sm:$0xff]  ;;  %p3858_p3 = por %p3857_p2, %p3856_p1 }
 0x3f1   : > { %p3859_p5 = pnand %p3858_p3, %p3852_p0 }
 0x3f2   : > { %v2495_v18 = vpop.permute.xlu1 %2494 }
 0x3f3   : > { %v2500_v49 = vpop.permute.xlu0 %2499  ;;  %v2516_v55 = vmul.f32 %v2495_v18, %v2468_v53  ;;  %v2471_v46 = vld [vmem:[#allocation4 + $0x38] sm:$0xff] }
 0x3f4   : > { %v2517_v60 = vmul.f32 %v2500_v49, %v2469_v58 }
 0x432   : > { %v2505_v52 = vpop.permute.xlu1 %2504 }
 0x433   : > { %v2518_v50 = vmul.f32 %v2505_v52, %v2470_v13 }
 0x435   : > { %v2552_v61 = vcombine.low %v2516_v55, %v2518_v50  ;;  %v2553_v6 = vcombine.high %v2516_v55, %v2518_v50 }
 0x436   : > { %v2510_v0 = vpop.permute.xlu0 %2509 }
 0x437   : > { %v2519_v9 = vmul.f32 %v2510_v0, %v2471_v46  ;;  %v2560_v54 = vrot.slane %v2552_v61, %v4637_v56  ;;  %v2567_v17 = vrot.slane %v2553_v6, %v4637_v56 }
 0x439   : > { %v2568_v62 = vcombine.low %v2517_v60, %v2519_v9  ;;  %v2569_v48 = vcombine.high %v2517_v60, %v2519_v9 }
 0x43b   : > { %v2576_v20 = vrot.slane %v2568_v62, %v4637_v56  ;;  %v2583_v21 = vrot.slane %v2569_v48, %v4637_v56 }
 0x43d   : > { %v2616_v11 = vcombine.low %v2560_v54, %v2576_v20  ;;  %v2617_v24 = vcombine.high %v2560_v54, %v2576_v20  ;;  %v2632_v27 = vcombine.low %v2567_v17, %v2583_v21  ;;  %v2633_v31 = vcombine.high %v2567_v17, %v2583_v21 }
 0x43f   : > { %v2624_v32 = vrot.slane %v2616_v11, %v4639_v51  ;;  %v2631_v33 = vrot.slane %v2617_v24, %v4639_v51  ;;  %v2640_v34 = vrot.slane %v2632_v27, %v4639_v51  ;;  %v2647_v4 = vrot.slane %v2633_v31, %v4639_v51 }
 0x441   : > { %v3125_v5 = vcombine.low %v2624_v32, %v2631_v33  ;;  %v3127_v8 = vcombine.high %v2624_v32, %v2631_v33  ;;  %v3129_v12 = vcombine.low %v2640_v34, %v2647_v4  ;;  %v3131_v14 = vcombine.high %v2640_v34, %v2647_v4 }
 0x443   : > { %v2671_v15 = vrot.slane %v3125_v5, %v4637_v56  ;;  %v2687_v63 = vrot.slane %v3127_v8, %v4637_v56  ;;  %v2703_v1 = vrot.slane %v3129_v12, %v4637_v56  ;;  %v2719_v2 = vrot.slane %v3131_v14, %v4637_v56 }
 0x445   : > { %v2736_v3 = vcombine.low %v2671_v15, %v2687_v63  ;;  %v2768_v7 = vcombine.low %v2703_v1, %v2719_v2  ;;  %v2737_v10 = vcombine.high %v2671_v15, %v2687_v63  ;;  %v2769_v16 = vcombine.high %v2703_v1, %v2719_v2 }
 0x447   : > { %v2744_v19 = vrot.slane %v2736_v3, %v4639_v51  ;;  %v2776_v26 = vrot.slane %v2768_v7, %v4639_v51  ;;  %v2751_v28 = vrot.slane %v2737_v10, %v4639_v51  ;;  %v2783_v29 = vrot.slane %v2769_v16, %v4639_v51 }
 0x449   : > { %v2789_v23 = vcombine.high %v2744_v19, %v2776_v26  ;;  %v2788_v22 = vcombine.low %v2744_v19, %v2776_v26  ;;  %v2791_v56 = vcombine.high %v2751_v28, %v2783_v29  ;;  %v2790_v35 = vcombine.low %v2751_v28, %v2783_v29 }
 0x44b   : > { %2809 = vrot.lane.b32.xlu1 %v2789_v23, %s3938_s5  ;;  %2805 = vrot.lane.b32.xlu0 %v2788_v22, %s3939_s6 }
 0x44f   : > { %2817 = vrot.lane.b32.xlu1 %v2791_v56, %s3940_s7  ;;  %2813 = vrot.lane.b32.xlu0 %v2790_v35, %s3941_s8 }
 0x45a   : > { %v2794_v36 = vpop.permute.xlu1 %2793  ;;  %v2798_v37 = vpop.permute.xlu0 %2797 }
 0x45b   : > { %v2820_v38 = vsel %vm347_vm0, %v2784_v40, %v2794_v36 }
 0x45c   : > { %v2822_v57 = vsel %vm2821_vm3, %v2820_v38, %v2798_v37 }
 0x45e   : > { %v2802_v51 = vpop.permute.xlu1 %2801 }
 0x45f   : > { %v2824_v59 = vsel %vm2823_vm4, %v2822_v57, %v2802_v51 }
 0x4bd   : > { %v2810_v41 = vpop.permute.xlu1 %2809  ;;  %v2806_v25 = vpop.permute.xlu0 %2805 }
 0x4be   : > { %v2826_v43 = vsel %vm2825_vm5, %v2824_v59, %v2806_v25 }
 0x4bf   : > { %v2828_v42 = vsel %vm2827_vm6, %v2826_v43, %v2810_v41 }
 0x4c1   : > { %v2818_v39 = vpop.permute.xlu1 %2817  ;;  %v2814_v40 = vpop.permute.xlu0 %2813 }
 0x4c2   : > { %v2830_v30 = vsel %vm2829_vm7, %v2828_v42, %v2814_v40 }
 0x4c3   : > { %v2832_v44 = vsel %vm2831_vm8, %v2830_v30, %v2818_v39 }
 0x4c4   : > { %2834 = vst.msk [vmem:[%s290_s12] sm:$0xff] %vm2833_vm9, %v2832_v44 }
 0x4c5   : > { %3862 = shalt.err (!%p3859_p5)
}
 0x4c6   : > { %s3863_s5 = scalar_lea.hbm %s4693_s22, 128  ;;  %s3867_s8 = scalar_lea.hbm %s4744_s4, 256 }
 0x4c7   : > { %p3864_p6 = scmp.ne.s32.totalorder %s4693_s22, %s3863_s5  ;;  %p3868_p10 = scmp.lt.u32.totalorder %s4693_s22, %s4744_s4 }
 0x4c8   : > { %p3869_p11 = scmp.lt.u32.totalorder %s3867_s8, %s3863_s5  ;;  %p3871_p13 = scmp.lt.u32.totalorder %s3863_s5, %s4693_s22 }
 0x4c9   : > { %p3865_p7 = pnand %p3864_p6, %p4008_p4 }
 0x4ca   : > { %p3870_p12 = por %p3869_p11, %p3868_p10 }
 0x4cb   : > { %p3866_p9 = pneg %p3865_p7 }
 0x4cc   : > { %p3872_p0 = por %p3871_p13, %p3870_p12 }
 0x4ce   : > { %p3873_p1 = pnand %p3872_p0, %p3866_p9 }
 0x4d0   : > { %3876 = shalt.err (!%p3873_p1)
}
 0x4d1   : > { %3603 = dma.vmem_to_hbm [thread:$0]  (%p4008_p4), %s4695_s13, 128, %s4693_s22, %s2836_s18  }
 0x4d2 PF: > { %p3609_p2 = scmp.ge.s32.totalorder %s3927_s20, 2  ;;  %s2862_s11 = sand.u32 1, %s3907_s15  }
 0x4d3   : > { %s2863_s12 = scalar_lea.sflag [#allocation6], %s2862_s11 }
 0x4d4   : > { %p3606_p3 = pnand %p3609_p2, %p4015_p8 }
 0x4d6   : > { %3902 = dma.done.wait (!%p3606_p3), %s2863_s12, 128  }
 0x4d7   : > { %3904 = vsyncadd (!%p3606_p3), %s2863_s12, 4294967168  ;;  %s17_s20 = sadd.s32 1, %s3927_s20   ;;  %s4747_s15 = smov %s3911_s16 }
 0x4d8   : > { %p14_p5 = scmp.ge.s32.totalorder %s17_s20, 4   ;;  %s4748_s16 = smov %s3915_s17 }
 0x4d9   : > { %s4749_s17 = smov %s4021_s28  ;;  %s4750_s18 = smov %s3923_s19 }
 0x4da   : > { %s4751_s19 = smov %s4753_s23  ;;  %16 = sbr.rel (!%p14_p5) target bundleno = 4 (0x4), region = 88 }
 0x4e1   :  { %2868 = vsyncpa [#allocation6], 1 }
 0x4e2   :  { %2870 = vsyncpa [#allocation6 + $0x1], 1 }

</bundles_post_ra>
